<compile_context>
chip_gen: v6e
topology: v6e:2x2x1
jax: 0.10.0
libtpu: 0.0.40
codegen_flags: <defaults>
</compile_context>

<pallas_src>
import functools

import jax
import jax.numpy as jnp
from jax.experimental import pallas as pl
from jax.experimental.pallas import tpu as pltpu

LN_EPS = 1e-5  # PyTorch nn.LayerNorm default


def psa_kernel(x_ref,
               w_chwq_ref,
               w_chwv_ref, b_chwv_ref,
               w_chwz_ref, b_chwz_ref,
               ln_g_ref, ln_b_ref,
               w_spwq_ref, b_spwq_ref,
               w_spwv_ref, b_spwv_ref,
               out_ref,
               m_ref, l_ref, acc_ref, xsum_ref,
               chw_ref, veff_ref, beff_ref,
               *, hw_total):
    phase = pl.program_id(1)
    t = pl.program_id(2)
    nt = pl.num_programs(2)

    x = x_ref[...].astype(jnp.float32)               # (C, T) current HW tile

    # ------------- phase 0: channel-pooling statistics over HW -------------
    @pl.when(phase == 0)
    def _stats():
        @pl.when(t == 0)
        def _init():
            m_ref[...] = jnp.full_like(m_ref, -jnp.inf)
            l_ref[...] = jnp.zeros_like(l_ref)
            acc_ref[...] = jnp.zeros_like(acc_ref)
            xsum_ref[...] = jnp.zeros_like(xsum_ref)

        # Channel-query logits for this tile: (1, T); online softmax over HW.
        s = jnp.dot(w_chwq_ref[...], x, preferred_element_type=jnp.float32)
        m_prev = m_ref[...]
        m_new = jnp.maximum(m_prev, jnp.max(s, axis=1, keepdims=True))
        alpha = jnp.exp(m_prev - m_new)
        p = jnp.exp(s - m_new)                                            # (1, T)
        l_ref[...] = alpha * l_ref[...] + jnp.sum(p, axis=1, keepdims=True)
        # x @ p^T on the MXU (contract over the HW lane dim) -> (C, 1)
        acc_ref[...] = alpha * acc_ref[...] + jax.lax.dot_general(
            x, p, dimension_numbers=(((1,), (1,)), ((), ())),
            preferred_element_type=jnp.float32)
        xsum_ref[...] = xsum_ref[...] + jnp.sum(x, axis=1, keepdims=True)
        m_ref[...] = m_new

        @pl.when(t == nt - 1)
        def _finalize():
            # Softmax-weighted pooling of x over HW: (C, 1)
            pooled = acc_ref[...] / l_ref[...]
            # ch_wz = ch_wv(pooled): exact since softmax weights sum to 1.
            ch_wz = jnp.dot(w_chwv_ref[...], pooled,
                            preferred_element_type=jnp.float32) + b_chwv_ref[...]
            z = jnp.dot(w_chwz_ref[...], ch_wz,
                        preferred_element_type=jnp.float32) + b_chwz_ref[...]
            # LayerNorm over C, then sigmoid -> per-channel gate (C, 1)
            mu = jnp.mean(z, axis=0, keepdims=True)
            var = jnp.mean((z - mu) * (z - mu), axis=0, keepdims=True)
            z_ln = (z - mu) * jax.lax.rsqrt(var + LN_EPS) * ln_g_ref[...] + ln_b_ref[...]
            ch_w = jax.nn.sigmoid(z_ln)
            chw_ref[...] = ch_w

            # Spatial query: avg-pool hoisted before the 1x1 conv, and
            # mean_HW(channel_out) == ch_w * mean_HW(x).
            mean_co = ch_w * (xsum_ref[...] * (1.0 / hw_total))
            q_log = jnp.dot(w_spwq_ref[...], mean_co,
                            preferred_element_type=jnp.float32) + b_spwq_ref[...]
            q_log = q_log - jnp.max(q_log, axis=0, keepdims=True)
            q = jnp.exp(q_log)
            q = q / jnp.sum(q, axis=0, keepdims=True)                     # (C/2, 1)
            # Fold softmax weights into the sp_wv projection:
            #   q^T @ (W @ co + b 1^T) == (q^T W) @ co + (q^T b)
            veff_ref[...] = jnp.sum(q * w_spwv_ref[...], axis=0, keepdims=True)  # (1, C)
            beff_ref[...] = jnp.sum(q * b_spwv_ref[...], axis=0, keepdims=True)  # (1, 1)

    # ------------- phase 1: apply channel + spatial gates per HW tile -------------
    @pl.when(phase == 1)
    def _apply():
        co = chw_ref[...] * x                                             # (C, T)
        sp = jnp.dot(veff_ref[...], co,
                     preferred_element_type=jnp.float32) + beff_ref[...]  # (1, T)
        out_ref[...] = (jax.nn.sigmoid(sp) * co).astype(out_ref.dtype)


def _pick_block_hw(hw, c, target_bytes=2 << 20):
    """Largest lane-dense (multiple of 128) HW tile dividing hw, ~<= target_bytes."""
    if hw % 128 != 0:
        # TODO(synk): pad HW to a lane multiple for very large non-128-divisible HW.
        return hw                       # fall back to a single full-HW block
    cap = max(128, (target_bytes // (4 * c)) // 128 * 128)
    if hw <= cap:
        return hw
    best, m = 128, 128
    while m <= min(hw, cap):
        if hw % m == 0:
            best = m
        m += 128
    return best


def sequential_polarized_self_attention(x_nchw, params, *, block_hw=None):
    """x_nchw: (B, C, H, W) float32. Returns (B, C, H, W)."""
    (w_chwv, b_chwv, w_chwq, b_chwq, w_chwz, b_chwz, ln_g, ln_b,
     w_spwv, b_spwv, w_spwq, b_spwq) = params
    del b_chwq  # constant added before a softmax over HW: mathematically a no-op
    b, c, h, w = x_nchw.shape
    assert c % 2 == 0
    hw = h * w
    if block_hw is None:
        block_hw = _pick_block_hw(hw, c)
    assert hw % block_hw == 0
    nt = hw // block_hw

    # NCHW -> (B, C, HW): free reshape, NO transpose (kernel consumes (C, HW)).
    x = x_nchw.reshape(b, c, hw)

    wspec = lambda arr: pl.BlockSpec(arr.shape, lambda bi, ph, ti: (0, 0))

    # Scoped-VMEM budget from the actual block footprint (x/out double-buffered
    # + resident weights + slack), capped to the smallest physical VMEM (v7x).
    blk = c * block_hw * 4
    vmem_limit = int(min(64 << 20, max(8 << 20, 6 * blk + 32 * c * c + (2 << 20))))

    kernel = functools.partial(psa_kernel, hw_total=float(hw))

    out = pl.pallas_call(
        kernel,
        out_shape=jax.ShapeDtypeStruct((b, c, hw), x.dtype),
        grid_spec=pltpu.PrefetchScalarGridSpec(
            num_scalar_prefetch=0,
            grid=(b, 2, nt),                      # (batch, phase, HW tile)
            in_specs=[
                pl.BlockSpec((None, c, block_hw), lambda bi, ph, ti: (bi, 0, ti)),
                wspec(w_chwq),
                wspec(w_chwv), wspec(b_chwv),
                wspec(w_chwz), wspec(b_chwz),
                wspec(ln_g), wspec(ln_b),
                wspec(w_spwq), wspec(b_spwq),
                wspec(w_spwv), wspec(b_spwv),
            ],
            # During phase 0 the out block index stays fixed (no spurious
            # writebacks); each HBM out block is written exactly once in phase 1.
            out_specs=pl.BlockSpec((None, c, block_hw),
                                   lambda bi, ph, ti: (bi, 0, ti * ph)),
            scratch_shapes=[
                pltpu.VMEM((1, 1), jnp.float32),   # running softmax max
                pltpu.VMEM((1, 1), jnp.float32),   # running softmax denom
                pltpu.VMEM((c, 1), jnp.float32),   # softmax-weighted x accumulator
                pltpu.VMEM((c, 1), jnp.float32),   # sum of x over HW
                pltpu.VMEM((c, 1), jnp.float32),   # channel gate sigmoid(LN(...))
                pltpu.VMEM((1, c), jnp.float32),   # folded spatial vector (1, C)
                pltpu.VMEM((1, 1), jnp.float32),   # folded spatial bias
            ]),
        compiler_params=pltpu.CompilerParams(
            dimension_semantics=("parallel", "arbitrary", "arbitrary"),
            vmem_limit_bytes=vmem_limit),
    )(x, w_chwq, w_chwv, b_chwv, w_chwz, b_chwz, ln_g, ln_b,
      w_spwq, b_spwq, w_spwv, b_spwv)

    return out.reshape(b, c, h, w)
    # TODO(synk): for B=1 on v7x, an additional HW-parallel apply-only kernel
    # would let phase 1 shard across both TensorCores.


def psa_reference(x_nchw, params):
    """Pure-JAX reference matching the PyTorch forward exactly."""
    (w_chwv, b_chwv, w_chwq, b_chwq, w_chwz, b_chwz, ln_g, ln_b,
     w_spwv, b_spwv, w_spwq, b_spwq) = params
    b, c, h, w = x_nchw.shape
    hw = h * w
    x = jnp.transpose(x_nchw.reshape(b, c, hw), (0, 2, 1))        # (B, HW, C)

    ch_wv = x @ w_chwv.T + b_chwv.reshape(1, 1, -1)               # (B, HW, C/2)
    ch_wq = x @ w_chwq.T + b_chwq.reshape(1, 1, -1)               # (B, HW, 1)
    ch_wq = jax.nn.softmax(ch_wq, axis=1)
    ch_wz = jnp.sum(ch_wv * ch_wq, axis=1, keepdims=True)         # (B, 1, C/2)
    z = ch_wz @ w_chwz.T + b_chwz.reshape(1, 1, -1)               # (B, 1, C)
    mu = z.mean(-1, keepdims=True)
    var = ((z - mu) ** 2).mean(-1, keepdims=True)
    z_ln = (z - mu) / jnp.sqrt(var + LN_EPS) * ln_g.reshape(1, 1, -1) + ln_b.reshape(1, 1, -1)
    channel_out = jax.nn.sigmoid(z_ln) * x                        # (B, HW, C)

    sp_wv = channel_out @ w_spwv.T + b_spwv.reshape(1, 1, -1)     # (B, HW, C/2)
    sp_wq = (channel_out @ w_spwq.T + b_spwq.reshape(1, 1, -1)).mean(1, keepdims=True)
    sp_wq = jax.nn.softmax(sp_wq, axis=-1)                        # (B, 1, C/2)
    sp_wz = jnp.sum(sp_wv * sp_wq, axis=-1, keepdims=True)        # (B, HW, 1)
    out = jax.nn.sigmoid(sp_wz) * channel_out
    return jnp.transpose(out, (0, 2, 1)).reshape(b, c, h, w)


def init_params(key, c):
    """Deterministic synthetic params. 1x1 conv weights stored as (C_out, C_in)."""
    c2 = c // 2
    ks = jax.random.split(key, 12)
    nrm = lambda k, s: jax.random.normal(k, s, jnp.float32) * 0.1
    w_chwv = nrm(ks[0], (c2, c)); b_chwv = nrm(ks[1], (c2, 1))
    w_chwq = nrm(ks[2], (1, c));  b_chwq = nrm(ks[3], (1, 1))
    w_chwz = nrm(ks[4], (c, c2)); b_chwz = nrm(ks[5], (c, 1))
    ln_g = 1.0 + nrm(ks[6], (c, 1))
    ln_b = nrm(ks[7], (c, 1))
    w_spwv = nrm(ks[8], (c2, c)); b_spwv = nrm(ks[9], (c2, 1))
    w_spwq = nrm(ks[10], (c2, c)); b_spwq = nrm(ks[11], (c2, 1))
    return (w_chwv, b_chwv, w_chwq, b_chwq, w_chwz, b_chwz, ln_g, ln_b,
            w_spwv, b_spwv, w_spwq, b_spwq)


if __name__ == "__main__":
    B, C, H, W = 2, 64, 16, 16          # HW = 256 -> two lane-dense tiles of 128
    key = jax.random.PRNGKey(0)
    kx, kp = jax.random.split(key)
    x = jax.random.normal(kx, (B, C, H, W), jnp.float32)
    params = init_params(kp, C)

    out = sequential_polarized_self_attention(x, params, block_hw=128)
    out = jax.block_until_ready(out)

    ref = jax.block_until_ready(psa_reference(x, params))
    assert out.shape == (B, C, H, W)
    err = float(jnp.max(jnp.abs(out - ref)))
    assert jnp.allclose(out, ref, atol=1e-4, rtol=1e-4), f"max abs err {err}"
    print("KERNEL_OK")
</pallas_src>

<mosaic_0001>
module attributes {stable_mosaic.version = 11 : i64} {
  func.func @psa_kernel(%arg0: i32, %arg1: i32, %arg2: i32, %arg3: memref<1x64x128xf32, #tpu.memory_space<vmem>>, %arg4: memref<1x64xf32, #tpu.memory_space<vmem>>, %arg5: memref<32x64xf32, #tpu.memory_space<vmem>>, %arg6: memref<32x1xf32, #tpu.memory_space<vmem>>, %arg7: memref<64x32xf32, #tpu.memory_space<vmem>>, %arg8: memref<64x1xf32, #tpu.memory_space<vmem>>, %arg9: memref<64x1xf32, #tpu.memory_space<vmem>>, %arg10: memref<64x1xf32, #tpu.memory_space<vmem>>, %arg11: memref<32x64xf32, #tpu.memory_space<vmem>>, %arg12: memref<32x1xf32, #tpu.memory_space<vmem>>, %arg13: memref<32x64xf32, #tpu.memory_space<vmem>>, %arg14: memref<32x1xf32, #tpu.memory_space<vmem>>, %arg15: memref<1x64x128xf32, #tpu.memory_space<vmem>>, %arg16: memref<1x1xf32, #tpu.memory_space<vmem>>, %arg17: memref<1x1xf32, #tpu.memory_space<vmem>>, %arg18: memref<64x1xf32, #tpu.memory_space<vmem>>, %arg19: memref<64x1xf32, #tpu.memory_space<vmem>>, %arg20: memref<64x1xf32, #tpu.memory_space<vmem>>, %arg21: memref<1x64xf32, #tpu.memory_space<vmem>>, %arg22: memref<1x1xf32, #tpu.memory_space<vmem>>) attributes {dimension_semantics = [#tpu.dimension_semantics<parallel>, #tpu.dimension_semantics<arbitrary>, #tpu.dimension_semantics<arbitrary>], iteration_bounds = array<i64: 2, 2, 2>, scalar_prefetch = 0 : i64, scratch_operands = 7 : i64, tpu.core_type = #tpu.core_type<tc>, window_params = [{transform_indices = @transform_0, window_bounds = array<i64: 1, 64, 128>}, {pipeline_mode = #tpu.pipeline_mode<synchronous>, transform_indices = @transform_1, window_bounds = array<i64: 1, 64>}, {pipeline_mode = #tpu.pipeline_mode<synchronous>, transform_indices = @transform_2, window_bounds = array<i64: 32, 64>}, {pipeline_mode = #tpu.pipeline_mode<synchronous>, transform_indices = @transform_3, window_bounds = array<i64: 32, 1>}, {pipeline_mode = #tpu.pipeline_mode<synchronous>, transform_indices = @transform_4, window_bounds = array<i64: 64, 32>}, {pipeline_mode = #tpu.pipeline_mode<synchronous>, transform_indices = @transform_5, window_bounds = array<i64: 64, 1>}, {pipeline_mode = #tpu.pipeline_mode<synchronous>, transform_indices = @transform_6, window_bounds = array<i64: 64, 1>}, {pipeline_mode = #tpu.pipeline_mode<synchronous>, transform_indices = @transform_7, window_bounds = array<i64: 64, 1>}, {pipeline_mode = #tpu.pipeline_mode<synchronous>, transform_indices = @transform_8, window_bounds = array<i64: 32, 64>}, {pipeline_mode = #tpu.pipeline_mode<synchronous>, transform_indices = @transform_9, window_bounds = array<i64: 32, 1>}, {pipeline_mode = #tpu.pipeline_mode<synchronous>, transform_indices = @transform_10, window_bounds = array<i64: 32, 64>}, {pipeline_mode = #tpu.pipeline_mode<synchronous>, transform_indices = @transform_11, window_bounds = array<i64: 32, 1>}, {transform_indices = @transform_12, window_bounds = array<i64: 1, 64, 128>}]} {
    %c0 = arith.constant 0 : index
    %c0_0 = arith.constant 0 : index
    %c0_1 = arith.constant 0 : index
    %0 = vector.load %arg3[%c0, %c0_0, %c0_1] : memref<1x64x128xf32, #tpu.memory_space<vmem>>, vector<1x64x128xf32>
    %1 = vector.shape_cast %0 : vector<1x64x128xf32> to vector<64x128xf32>
    %c0_i32 = arith.constant 0 : i32
    %2 = arith.cmpi eq, %arg1, %c0_i32 : i32
    %3 = arith.extui %2 : i1 to i32
    %c0_i32_2 = arith.constant 0 : i32
    %4 = arith.cmpi ne, %3, %c0_i32_2 : i32
    scf.if %4 {
      %c0_i32_4 = arith.constant 0 : i32
      %8 = arith.cmpi eq, %arg2, %c0_i32_4 : i32
      %9 = arith.extui %8 : i1 to i32
      %c0_i32_5 = arith.constant 0 : i32
      %10 = arith.cmpi ne, %9, %c0_i32_5 : i32
      scf.if %10 {
        %cst_30 = arith.constant 0xFF800000 : f32
        %43 = vector.broadcast %cst_30 : f32 to vector<1x1xf32>
        %c0_31 = arith.constant 0 : index
        %c0_32 = arith.constant 0 : index
        %44 = vector.load %arg16[%c0_31, %c0_32] : memref<1x1xf32, #tpu.memory_space<vmem>>, vector<1x1xf32>
        tpu.vector_store %arg16[%c0_31, %c0_32], %43 {strides = array<i32>} : memref<1x1xf32, #tpu.memory_space<vmem>>, vector<1x1xf32>,
        %cst_33 = arith.constant 0.000000e+00 : f32
        %45 = vector.broadcast %cst_33 : f32 to vector<1x1xf32>
        %c0_34 = arith.constant 0 : index
        %c0_35 = arith.constant 0 : index
        %46 = vector.load %arg17[%c0_34, %c0_35] : memref<1x1xf32, #tpu.memory_space<vmem>>, vector<1x1xf32>
        tpu.vector_store %arg17[%c0_34, %c0_35], %45 {strides = array<i32>} : memref<1x1xf32, #tpu.memory_space<vmem>>, vector<1x1xf32>,
        %cst_36 = arith.constant 0.000000e+00 : f32
        %47 = vector.broadcast %cst_36 : f32 to vector<64x1xf32>
        %c0_37 = arith.constant 0 : index
        %c0_38 = arith.constant 0 : index
        %48 = vector.load %arg18[%c0_37, %c0_38] : memref<64x1xf32, #tpu.memory_space<vmem>>, vector<64x1xf32>
        tpu.vector_store %arg18[%c0_37, %c0_38], %47 {strides = array<i32>} : memref<64x1xf32, #tpu.memory_space<vmem>>, vector<64x1xf32>,
        %cst_39 = arith.constant 0.000000e+00 : f32
        %49 = vector.broadcast %cst_39 : f32 to vector<64x1xf32>
        %c0_40 = arith.constant 0 : index
        %c0_41 = arith.constant 0 : index
        %50 = vector.load %arg19[%c0_40, %c0_41] : memref<64x1xf32, #tpu.memory_space<vmem>>, vector<64x1xf32>
        tpu.vector_store %arg19[%c0_40, %c0_41], %49 {strides = array<i32>} : memref<64x1xf32, #tpu.memory_space<vmem>>, vector<64x1xf32>,
      } else {
      }
      %c0_6 = arith.constant 0 : index
      %c0_7 = arith.constant 0 : index
      %11 = vector.load %arg4[%c0_6, %c0_7] : memref<1x64xf32, #tpu.memory_space<vmem>>, vector<1x64xf32>
      %cst = arith.constant dense<0.000000e+00> : vector<1x128xf32>
      %12 = tpu.matmul %11, %1, %cst {dimension_numbers = #tpu.dot_dimension_numbers<[1], [0], [0], [1], [0, 0, 1, 1], [], []>} : vector<1x64xf32>, vector<64x128xf32>, vector<1x128xf32> -> vector<1x128xf32>
      %c0_8 = arith.constant 0 : index
      %c0_9 = arith.constant 0 : index
      %13 = vector.load %arg16[%c0_8, %c0_9] : memref<1x1xf32, #tpu.memory_space<vmem>>, vector<1x1xf32>
      %cst_10 = arith.constant dense<0xFF800000> : vector<1xf32>
      %14 = vector.multi_reduction <maximumf>, %12, %cst_10 [1] : vector<1x128xf32> to vector<1xf32>
      %15 = vector.shape_cast %14 : vector<1xf32> to vector<1x1xf32>
      %16 = arith.maximumf %13, %15 : vector<1x1xf32>
      %17 = arith.subf %13, %16 : vector<1x1xf32>
      %18 = math.exp %17 : vector<1x1xf32>
      %19 = vector.broadcast %16 : vector<1x1xf32> to vector<1x128xf32>
      %20 = arith.subf %12, %19 : vector<1x128xf32>
      %21 = math.exp %20 : vector<1x128xf32>
      %c0_11 = arith.constant 0 : index
      %c0_12 = arith.constant 0 : index
      %22 = vector.load %arg17[%c0_11, %c0_12] : memref<1x1xf32, #tpu.memory_space<vmem>>, vector<1x1xf32>
      %23 = arith.mulf %18, %22 : vector<1x1xf32>
      %cst_13 = arith.constant dense<0.000000e+00> : vector<1xf32>
      %24 = vector.multi_reduction <add>, %21, %cst_13 [1] : vector<1x128xf32> to vector<1xf32>
      %25 = vector.shape_cast %24 : vector<1xf32> to vector<1x1xf32>
      %26 = arith.addf %23, %25 : vector<1x1xf32>
      %c0_14 = arith.constant 0 : index
      %c0_15 = arith.constant 0 : index
      %27 = vector.load %arg17[%c0_14, %c0_15] : memref<1x1xf32, #tpu.memory_space<vmem>>, vector<1x1xf32>
      tpu.vector_store %arg17[%c0_14, %c0_15], %26 {strides = array<i32>} : memref<1x1xf32, #tpu.memory_space<vmem>>, vector<1x1xf32>,
      %c0_16 = arith.constant 0 : index
      %c0_17 = arith.constant 0 : index
      %28 = vector.load %arg18[%c0_16, %c0_17] : memref<64x1xf32, #tpu.memory_space<vmem>>, vector<64x1xf32>
      %29 = vector.broadcast %18 : vector<1x1xf32> to vector<64x1xf32>
      %30 = arith.mulf %29, %28 : vector<64x1xf32>
      %cst_18 = arith.constant dense<0.000000e+00> : vector<64x1xf32>
      %31 = tpu.matmul %1, %21, %cst_18 {dimension_numbers = #tpu.dot_dimension_numbers<[1], [1], [0], [0], [0, 0, 1, 0], [], []>} : vector<64x128xf32>, vector<1x128xf32>, vector<64x1xf32> -> vector<64x1xf32>
      %32 = arith.addf %30, %31 : vector<64x1xf32>
      %c0_19 = arith.constant 0 : index
      %c0_20 = arith.constant 0 : index
      %33 = vector.load %arg18[%c0_19, %c0_20] : memref<64x1xf32, #tpu.memory_space<vmem>>, vector<64x1xf32>
      tpu.vector_store %arg18[%c0_19, %c0_20], %32 {strides = array<i32>} : memref<64x1xf32, #tpu.memory_space<vmem>>, vector<64x1xf32>,
      %c0_21 = arith.constant 0 : index
      %c0_22 = arith.constant 0 : index
      %34 = vector.load %arg19[%c0_21, %c0_22] : memref<64x1xf32, #tpu.memory_space<vmem>>, vector<64x1xf32>
      %cst_23 = arith.constant dense<0.000000e+00> : vector<64xf32>
      %35 = vector.multi_reduction <add>, %1, %cst_23 [1] : vector<64x128xf32> to vector<64xf32>
      %36 = vector.shape_cast %35 : vector<64xf32> to vector<64x1xf32>
      %37 = arith.addf %34, %36 : vector<64x1xf32>
      %c0_24 = arith.constant 0 : index
      %c0_25 = arith.constant 0 : index
      %38 = vector.load %arg19[%c0_24, %c0_25] : memref<64x1xf32, #tpu.memory_space<vmem>>, vector<64x1xf32>
      tpu.vector_store %arg19[%c0_24, %c0_25], %37 {strides = array<i32>} : memref<64x1xf32, #tpu.memory_space<vmem>>, vector<64x1xf32>,
      %c0_26 = arith.constant 0 : index
      %c0_27 = arith.constant 0 : index
      %39 = vector.load %arg16[%c0_26, %c0_27] : memref<1x1xf32, #tpu.memory_space<vmem>>, vector<1x1xf32>
      tpu.vector_store %arg16[%c0_26, %c0_27], %16 {strides = array<i32>} : memref<1x1xf32, #tpu.memory_space<vmem>>, vector<1x1xf32>,
      %c1_i32_28 = arith.constant 1 : i32
      %40 = arith.cmpi eq, %arg2, %c1_i32_28 : i32
      %41 = arith.extui %40 : i1 to i32
      %c0_i32_29 = arith.constant 0 : i32
      %42 = arith.cmpi ne, %41, %c0_i32_29 : i32
      scf.if %42 {
        %c0_30 = arith.constant 0 : index
        %c0_31 = arith.constant 0 : index
        %43 = vector.load %arg18[%c0_30, %c0_31] : memref<64x1xf32, #tpu.memory_space<vmem>>, vector<64x1xf32>
        %c0_32 = arith.constant 0 : index
        %c0_33 = arith.constant 0 : index
        %44 = vector.load %arg17[%c0_32, %c0_33] : memref<1x1xf32, #tpu.memory_space<vmem>>, vector<1x1xf32>
        %45 = vector.broadcast %44 : vector<1x1xf32> to vector<64x1xf32>
        %46 = arith.divf %43, %45 : vector<64x1xf32>
        %c0_34 = arith.constant 0 : index
        %c0_35 = arith.constant 0 : index
        %47 = vector.load %arg5[%c0_34, %c0_35] : memref<32x64xf32, #tpu.memory_space<vmem>>, vector<32x64xf32>
        %cst_36 = arith.constant dense<0.000000e+00> : vector<32x1xf32>
        %48 = tpu.matmul %47, %46, %cst_36 {dimension_numbers = #tpu.dot_dimension_numbers<[1], [0], [0], [1], [0, 0, 1, 1], [], []>} : vector<32x64xf32>, vector<64x1xf32>, vector<32x1xf32> -> vector<32x1xf32>
        %c0_37 = arith.constant 0 : index
        %c0_38 = arith.constant 0 : index
        %49 = vector.load %arg6[%c0_37, %c0_38] : memref<32x1xf32, #tpu.memory_space<vmem>>, vector<32x1xf32>
        %50 = arith.addf %48, %49 : vector<32x1xf32>
        %c0_39 = arith.constant 0 : index
        %c0_40 = arith.constant 0 : index
        %51 = vector.load %arg7[%c0_39, %c0_40] : memref<64x32xf32, #tpu.memory_space<vmem>>, vector<64x32xf32>
        %cst_41 = arith.constant dense<0.000000e+00> : vector<64x1xf32>
        %52 = tpu.matmul %51, %50, %cst_41 {dimension_numbers = #tpu.dot_dimension_numbers<[1], [0], [0], [1], [0, 0, 1, 1], [], []>} : vector<64x32xf32>, vector<32x1xf32>, vector<64x1xf32> -> vector<64x1xf32>
        %c0_42 = arith.constant 0 : index
        %c0_43 = arith.constant 0 : index
        %53 = vector.load %arg8[%c0_42, %c0_43] : memref<64x1xf32, #tpu.memory_space<vmem>>, vector<64x1xf32>
        %54 = arith.addf %52, %53 : vector<64x1xf32>
        %cst_44 = arith.constant dense<0.000000e+00> : vector<1xf32>
        %55 = vector.multi_reduction <add>, %54, %cst_44 [0] : vector<64x1xf32> to vector<1xf32>
        %56 = vector.shape_cast %55 : vector<1xf32> to vector<1x1xf32>
        %cst_45 = arith.constant 6.400000e+01 : f32
        %57 = vector.broadcast %cst_45 : f32 to vector<1x1xf32>
        %58 = arith.divf %56, %57 : vector<1x1xf32>
        %59 = vector.broadcast %58 : vector<1x1xf32> to vector<64x1xf32>
        %60 = arith.subf %54, %59 : vector<64x1xf32>
        %61 = vector.broadcast %58 : vector<1x1xf32> to vector<64x1xf32>
        %62 = arith.subf %54, %61 : vector<64x1xf32>
        %63 = arith.mulf %60, %62 : vector<64x1xf32>
        %cst_46 = arith.constant dense<0.000000e+00> : vector<1xf32>
        %64 = vector.multi_reduction <add>, %63, %cst_46 [0] : vector<64x1xf32> to vector<1xf32>
        %65 = vector.shape_cast %64 : vector<1xf32> to vector<1x1xf32>
        %cst_47 = arith.constant 6.400000e+01 : f32
        %66 = vector.broadcast %cst_47 : f32 to vector<1x1xf32>
        %67 = arith.divf %65, %66 : vector<1x1xf32>
        %68 = vector.broadcast %58 : vector<1x1xf32> to vector<64x1xf32>
        %69 = arith.subf %54, %68 : vector<64x1xf32>
        %cst_48 = arith.constant 9.99999974E-6 : f32
        %70 = vector.broadcast %cst_48 : f32 to vector<1x1xf32>
        %71 = arith.addf %67, %70 : vector<1x1xf32>
        %72 = math.rsqrt %71 : vector<1x1xf32>
        %73 = vector.broadcast %72 : vector<1x1xf32> to vector<64x1xf32>
        %74 = arith.mulf %69, %73 : vector<64x1xf32>
        %c0_49 = arith.constant 0 : index
        %c0_50 = arith.constant 0 : index
        %75 = vector.load %arg9[%c0_49, %c0_50] : memref<64x1xf32, #tpu.memory_space<vmem>>, vector<64x1xf32>
        %76 = arith.mulf %74, %75 : vector<64x1xf32>
        %c0_51 = arith.constant 0 : index
        %c0_52 = arith.constant 0 : index
        %77 = vector.load %arg10[%c0_51, %c0_52] : memref<64x1xf32, #tpu.memory_space<vmem>>, vector<64x1xf32>
        %78 = arith.addf %76, %77 : vector<64x1xf32>
        %79 = arith.negf %78 : vector<64x1xf32>
        %80 = math.exp %79 : vector<64x1xf32>
        %cst_53 = arith.constant 1.000000e+00 : f32
        %81 = vector.broadcast %cst_53 : f32 to vector<64x1xf32>
        %82 = arith.addf %81, %80 : vector<64x1xf32>
        %83 = arith.divf %81, %82 : vector<64x1xf32>
        %c0_54 = arith.constant 0 : index
        %c0_55 = arith.constant 0 : index
        %84 = vector.load %arg20[%c0_54, %c0_55] : memref<64x1xf32, #tpu.memory_space<vmem>>, vector<64x1xf32>
        tpu.vector_store %arg20[%c0_54, %c0_55], %83 {strides = array<i32>} : memref<64x1xf32, #tpu.memory_space<vmem>>, vector<64x1xf32>,
        %c0_56 = arith.constant 0 : index
        %c0_57 = arith.constant 0 : index
        %85 = vector.load %arg19[%c0_56, %c0_57] : memref<64x1xf32, #tpu.memory_space<vmem>>, vector<64x1xf32>
        %cst_58 = arith.constant 3.906250e-03 : f32
        %86 = vector.broadcast %cst_58 : f32 to vector<64x1xf32>
        %87 = arith.mulf %85, %86 : vector<64x1xf32>
        %88 = arith.mulf %83, %87 : vector<64x1xf32>
        %c0_59 = arith.constant 0 : index
        %c0_60 = arith.constant 0 : index
        %89 = vector.load %arg11[%c0_59, %c0_60] : memref<32x64xf32, #tpu.memory_space<vmem>>, vector<32x64xf32>
        %cst_61 = arith.constant dense<0.000000e+00> : vector<32x1xf32>
        %90 = tpu.matmul %89, %88, %cst_61 {dimension_numbers = #tpu.dot_dimension_numbers<[1], [0], [0], [1], [0, 0, 1, 1], [], []>} : vector<32x64xf32>, vector<64x1xf32>, vector<32x1xf32> -> vector<32x1xf32>
        %c0_62 = arith.constant 0 : index
        %c0_63 = arith.constant 0 : index
        %91 = vector.load %arg12[%c0_62, %c0_63] : memref<32x1xf32, #tpu.memory_space<vmem>>, vector<32x1xf32>
        %92 = arith.addf %90, %91 : vector<32x1xf32>
        %cst_64 = arith.constant dense<0xFF800000> : vector<1xf32>
        %93 = vector.multi_reduction <maximumf>, %92, %cst_64 [0] : vector<32x1xf32> to vector<1xf32>
        %94 = vector.shape_cast %93 : vector<1xf32> to vector<1x1xf32>
        %95 = vector.broadcast %94 : vector<1x1xf32> to vector<32x1xf32>
        %96 = arith.subf %92, %95 : vector<32x1xf32>
        %97 = math.exp %96 : vector<32x1xf32>
        %cst_65 = arith.constant dense<0.000000e+00> : vector<1xf32>
        %98 = vector.multi_reduction <add>, %97, %cst_65 [0] : vector<32x1xf32> to vector<1xf32>
        %99 = vector.shape_cast %98 : vector<1xf32> to vector<1x1xf32>
        %100 = vector.broadcast %99 : vector<1x1xf32> to vector<32x1xf32>
        %101 = arith.divf %97, %100 : vector<32x1xf32>
        %c0_66 = arith.constant 0 : index
        %c0_67 = arith.constant 0 : index
        %102 = vector.load %arg13[%c0_66, %c0_67] : memref<32x64xf32, #tpu.memory_space<vmem>>, vector<32x64xf32>
        %103 = vector.broadcast %101 : vector<32x1xf32> to vector<32x64xf32>
        %104 = arith.mulf %103, %102 : vector<32x64xf32>
        %cst_68 = arith.constant dense<0.000000e+00> : vector<64xf32>
        %105 = vector.multi_reduction <add>, %104, %cst_68 [0] : vector<32x64xf32> to vector<64xf32>
        %106 = vector.shape_cast %105 : vector<64xf32> to vector<1x64xf32>
        %c0_69 = arith.constant 0 : index
        %c0_70 = arith.constant 0 : index
        %107 = vector.load %arg21[%c0_69, %c0_70] : memref<1x64xf32, #tpu.memory_space<vmem>>, vector<1x64xf32>
        tpu.vector_store %arg21[%c0_69, %c0_70], %106 {strides = array<i32>} : memref<1x64xf32, #tpu.memory_space<vmem>>, vector<1x64xf32>,
        %c0_71 = arith.constant 0 : index
        %c0_72 = arith.constant 0 : index
        %108 = vector.load %arg14[%c0_71, %c0_72] : memref<32x1xf32, #tpu.memory_space<vmem>>, vector<32x1xf32>
        %109 = arith.mulf %101, %108 : vector<32x1xf32>
        %cst_73 = arith.constant dense<0.000000e+00> : vector<1xf32>
        %110 = vector.multi_reduction <add>, %109, %cst_73 [0] : vector<32x1xf32> to vector<1xf32>
        %111 = vector.shape_cast %110 : vector<1xf32> to vector<1x1xf32>
        %c0_74 = arith.constant 0 : index
        %c0_75 = arith.constant 0 : index
        %112 = vector.load %arg22[%c0_74, %c0_75] : memref<1x1xf32, #tpu.memory_space<vmem>>, vector<1x1xf32>
        tpu.vector_store %arg22[%c0_74, %c0_75], %111 {strides = array<i32>} : memref<1x1xf32, #tpu.memory_space<vmem>>, vector<1x1xf32>,
      } else {
      }
    } else {
    }
    %c1_i32 = arith.constant 1 : i32
    %5 = arith.cmpi eq, %arg1, %c1_i32 : i32
    %6 = arith.extui %5 : i1 to i32
    %c0_i32_3 = arith.constant 0 : i32
    %7 = arith.cmpi ne, %6, %c0_i32_3 : i32
    scf.if %7 {
      %c0_4 = arith.constant 0 : index
      %c0_5 = arith.constant 0 : index
      %8 = vector.load %arg20[%c0_4, %c0_5] : memref<64x1xf32, #tpu.memory_space<vmem>>, vector<64x1xf32>
      %9 = vector.broadcast %8 : vector<64x1xf32> to vector<64x128xf32>
      %10 = arith.mulf %9, %1 : vector<64x128xf32>
      %c0_6 = arith.constant 0 : index
      %c0_7 = arith.constant 0 : index
      %11 = vector.load %arg21[%c0_6, %c0_7] : memref<1x64xf32, #tpu.memory_space<vmem>>, vector<1x64xf32>
      %cst = arith.constant dense<0.000000e+00> : vector<1x128xf32>
      %12 = tpu.matmul %11, %10, %cst {dimension_numbers = #tpu.dot_dimension_numbers<[1], [0], [0], [1], [0, 0, 1, 1], [], []>} : vector<1x64xf32>, vector<64x128xf32>, vector<1x128xf32> -> vector<1x128xf32>
      %c0_8 = arith.constant 0 : index
      %c0_9 = arith.constant 0 : index
      %13 = vector.load %arg22[%c0_8, %c0_9] : memref<1x1xf32, #tpu.memory_space<vmem>>, vector<1x1xf32>
      %14 = vector.broadcast %13 : vector<1x1xf32> to vector<1x128xf32>
      %15 = arith.addf %12, %14 : vector<1x128xf32>
      %16 = arith.negf %15 : vector<1x128xf32>
      %17 = math.exp %16 : vector<1x128xf32>
      %cst_10 = arith.constant 1.000000e+00 : f32
      %18 = vector.broadcast %cst_10 : f32 to vector<1x128xf32>
      %19 = arith.addf %18, %17 : vector<1x128xf32>
      %20 = arith.divf %18, %19 : vector<1x128xf32>
      %21 = vector.broadcast %20 : vector<1x128xf32> to vector<64x128xf32>
      %22 = arith.mulf %21, %10 : vector<64x128xf32>
      %c0_11 = arith.constant 0 : index
      %c0_12 = arith.constant 0 : index
      %c0_13 = arith.constant 0 : index
      %23 = vector.load %arg15[%c0_11, %c0_12, %c0_13] : memref<1x64x128xf32, #tpu.memory_space<vmem>>, vector<1x64x128xf32>
      %24 = vector.shape_cast %23 : vector<1x64x128xf32> to vector<64x128xf32>
      %25 = vector.shape_cast %22 : vector<64x128xf32> to vector<1x64x128xf32>
      tpu.vector_store %arg15[%c0_11, %c0_12, %c0_13], %25 {strides = array<i32>} : memref<1x64x128xf32, #tpu.memory_space<vmem>>, vector<1x64x128xf32>,
    } else {
    }
    return
  }
  func.func @transform_0(%arg0: i32, %arg1: i32, %arg2: i32) -> (i32, i32, i32) {
    %c0_i32 = arith.constant 0 : i32
    %c0_i32_0 = arith.constant 0 : i32
    return %arg0, %c0_i32, %arg2 : i32, i32, i32
  }
  func.func @transform_1(%arg0: i32, %arg1: i32, %arg2: i32) -> (i32, i32) {
    %c0_i32 = arith.constant 0 : i32
    %c0_i32_0 = arith.constant 0 : i32
    %c0_i32_1 = arith.constant 0 : i32
    return %c0_i32, %c0_i32_0 : i32, i32
  }
  func.func @transform_2(%arg0: i32, %arg1: i32, %arg2: i32) -> (i32, i32) {
    %c0_i32 = arith.constant 0 : i32
    %c0_i32_0 = arith.constant 0 : i32
    %c0_i32_1 = arith.constant 0 : i32
    return %c0_i32, %c0_i32_0 : i32, i32
  }
  func.func @transform_3(%arg0: i32, %arg1: i32, %arg2: i32) -> (i32, i32) {
    %c0_i32 = arith.constant 0 : i32
    %c0_i32_0 = arith.constant 0 : i32
    %c0_i32_1 = arith.constant 0 : i32
    return %c0_i32, %c0_i32_0 : i32, i32
  }
  func.func @transform_4(%arg0: i32, %arg1: i32, %arg2: i32) -> (i32, i32) {
    %c0_i32 = arith.constant 0 : i32
    %c0_i32_0 = arith.constant 0 : i32
    %c0_i32_1 = arith.constant 0 : i32
    return %c0_i32, %c0_i32_0 : i32, i32
  }
  func.func @transform_5(%arg0: i32, %arg1: i32, %arg2: i32) -> (i32, i32) {
    %c0_i32 = arith.constant 0 : i32
    %c0_i32_0 = arith.constant 0 : i32
    %c0_i32_1 = arith.constant 0 : i32
    return %c0_i32, %c0_i32_0 : i32, i32
  }
  func.func @transform_6(%arg0: i32, %arg1: i32, %arg2: i32) -> (i32, i32) {
    %c0_i32 = arith.constant 0 : i32
    %c0_i32_0 = arith.constant 0 : i32
    %c0_i32_1 = arith.constant 0 : i32
    return %c0_i32, %c0_i32_0 : i32, i32
  }
  func.func @transform_7(%arg0: i32, %arg1: i32, %arg2: i32) -> (i32, i32) {
    %c0_i32 = arith.constant 0 : i32
    %c0_i32_0 = arith.constant 0 : i32
    %c0_i32_1 = arith.constant 0 : i32
    return %c0_i32, %c0_i32_0 : i32, i32
  }
  func.func @transform_8(%arg0: i32, %arg1: i32, %arg2: i32) -> (i32, i32) {
    %c0_i32 = arith.constant 0 : i32
    %c0_i32_0 = arith.constant 0 : i32
    %c0_i32_1 = arith.constant 0 : i32
    return %c0_i32, %c0_i32_0 : i32, i32
  }
  func.func @transform_9(%arg0: i32, %arg1: i32, %arg2: i32) -> (i32, i32) {
    %c0_i32 = arith.constant 0 : i32
    %c0_i32_0 = arith.constant 0 : i32
    %c0_i32_1 = arith.constant 0 : i32
    return %c0_i32, %c0_i32_0 : i32, i32
  }
  func.func @transform_10(%arg0: i32, %arg1: i32, %arg2: i32) -> (i32, i32) {
    %c0_i32 = arith.constant 0 : i32
    %c0_i32_0 = arith.constant 0 : i32
    %c0_i32_1 = arith.constant 0 : i32
    return %c0_i32, %c0_i32_0 : i32, i32
  }
  func.func @transform_11(%arg0: i32, %arg1: i32, %arg2: i32) -> (i32, i32) {
    %c0_i32 = arith.constant 0 : i32
    %c0_i32_0 = arith.constant 0 : i32
    %c0_i32_1 = arith.constant 0 : i32
    return %c0_i32, %c0_i32_0 : i32, i32
  }
  func.func @transform_12(%arg0: i32, %arg1: i32, %arg2: i32) -> (i32, i32, i32) {
    %0 = arith.muli %arg2, %arg1 : i32
    %c0_i32 = arith.constant 0 : i32
    %c0_i32_0 = arith.constant 0 : i32
    return %arg0, %c0_i32, %0 : i32, i32, i32
  }
}

</mosaic_0001>

<bundles_post_ra>
// kernel: tpu_custom_call.1
= control target key start
LH: loop header
LB: loop body
LE: loop exit
PB: predicated region body
PF: predicated region fallthrough
CT: control target
= control target key end

     0   :  { %s2818_s0 = inlined_call_operand.vmem [shape: f32[2,64,256], index: 0, kind: input, shape index: {}]   ;;  %s2819_s1 = inlined_call_operand.vmem [shape: f32[1,64], index: 1, kind: input, shape index: {}]   ;;  %s2820_s2 = inlined_call_operand.vmem [shape: f32[32,64], index: 2, kind: input, shape index: {}]   ;;  %s2821_s3 = inlined_call_operand.vmem [shape: f32[32,1], index: 3, kind: input, shape index: {}]   ;;  %s2822_s4 = inlined_call_operand.vmem [shape: f32[64,32], index: 4, kind: input, shape index: {}]   ;;  %s2823_s5 = inlined_call_operand.vmem [shape: f32[64,1], index: 5, kind: input, shape index: {}]   ;;  %s2824_s6 = inlined_call_operand.vmem [shape: f32[64,1], index: 6, kind: input, shape index: {}]   ;;  %s2825_s7 = inlined_call_operand.vmem [shape: f32[64,1], index: 7, kind: input, shape index: {}]   ;;  %s2826_s8 = inlined_call_operand.vmem [shape: f32[32,64], index: 8, kind: input, shape index: {}]   ;;  %s2827_s9 = inlined_call_operand.vmem [shape: f32[32,1], index: 9, kind: input, shape index: {}]   ;;  %s2828_s10 = inlined_call_operand.vmem [shape: f32[32,64], index: 10, kind: input, shape index: {}]   ;;  %s2829_s11 = inlined_call_operand.vmem [shape: f32[32,1], index: 11, kind: input, shape index: {}]   ;;  %s2830_s12 = inlined_call_operand.hbm [shape: f32[2,64,256], index: 12, kind: output, shape index: {}]  }
   0x1   :  { %2847 = sst [smem:[#allocation16_spill]] %s2818_s0 }
   0x2   :  { %2848 = sst [smem:[#allocation17_spill]] %s2819_s1 }
   0x3   :  { %2849 = sst [smem:[#allocation18_spill]] %s2820_s2 }
   0x4   :  { %2850 = sst [smem:[#allocation19_spill]] %s2821_s3 }
   0x5   :  { %2851 = sst [smem:[#allocation20_spill]] %s2822_s4 }
   0x6   :  { %2852 = sst [smem:[#allocation21_spill]] %s2823_s5 }
   0x7   :  { %2853 = sst [smem:[#allocation22_spill]] %s2824_s6 }
   0x8   :  { %2854 = sst [smem:[#allocation23_spill]] %s2825_s7 }
   0x9   :  { %2855 = sst [smem:[#allocation24_spill]] %s2826_s8 }
   0xa   :  { %2856 = sst [smem:[#allocation25_spill]] %s2827_s9 }
   0xb   :  { %2857 = sst [smem:[#allocation26_spill]] %s2828_s10 }
   0xc   :  { %2858 = sst [smem:[#allocation27_spill]] %s2829_s11 }
   0xd   :  { %2859 = sst [smem:[#allocation28_spill]] %s2830_s12 }
   0xe   :  { %17 = vsyncpa [#allocation11], 0 }
   0xf   :  { %19 = vsyncpa [#allocation11 + $0x1], 0  ;;  %s2283_s21 = smov 0   ;;  %s2285_s22 = smov 0  }
  0x10   :  { %s2287_s23 = smov 0   ;;  %s2289_s24 = smov 0  }
  0x11   :  { %s2291_s25 = smov 0   ;;  %s2293_s26 = smov 0  }
  0x12   :  { %s2295_s27 = smov 0   ;;  %s2297_s28 = smov 0  }
  0x13   :  { %s2299_s29 = smov 0   ;;  %s2301_s30 = smov 0  }
  0x14   :  { %s2303_s13 = smov 0   ;;  %s2305_s14 = smov 0  }
  0x15 LB: > { %2860 = sst [smem:[#allocation13_spill]] %s2187_s28  ;;  %s1702_s15 = sadd.s32 4294967295, %s2203_s14   ;;  %s2203_s14 = sphi %s2305_s14, %s25_s14   ;;  %s2199_s13 = sphi %s2303_s13, %s2894_s13   ;;  %s2195_s30 = sphi %s2301_s30, %s2885_s30   ;;  %s2191_s29 = sphi %s2299_s29, %s2893_s29   ;;  %s2187_s28 = sphi %s2297_s28, %s2892_s28   ;;  %s2183_s27 = sphi %s2295_s27, %s2884_s27   ;;  %s2179_s26 = sphi %s2293_s26, %s2891_s26   ;;  %s2175_s25 = sphi %s2291_s25, %s2890_s25   ;;  %s2171_s24 = sphi %s2289_s24, %s2889_s24   ;;  %s2167_s23 = sphi %s2287_s23, %s2888_s23   ;;  %s2163_s22 = sphi %s2285_s22, %s2887_s22   ;;  %s2159_s21 = sphi %s2283_s21, %s2886_s21  }
  0x16   : > { %2861 = sst [smem:[#allocation14_spill]] %s2195_s30  ;;  %s1703_s16 = sadd.s32 4294967294, %s2203_s14  }
  0x17   : > { %s37_s17 = sadd.s32 1, %s2191_s29  ;;  %s40_s18 = sadd.s32 1, %s2195_s30 }
  0x18   : > { %p38_p0 = scmp.ge.s32.totalorder %s37_s17, 2  ;;  %s44_s19 = sadd.s32 1, %s2199_s13 }
  0x19   : > { %p60_p1 = scmp.ne.s32.totalorder %s2175_s25, %s2171_s24  ;;  %s53_s20 = sadd.s32 1, %s2175_s25 }
  0x1a   : > { %s2896_s17 = smov (%p38_p0, %s37_s17), 0  ;;  %s2898_s18 = smov (!%p38_p0, %s40_s18), %s2195_s30 }
  0x1b   : > { %p61_p2 = scmp.eq.s32.totalorder %s2203_s14, 0  ;;  %p42_p3 = scmp.ge.s32.totalorder %s2898_s18, 2 }
  0x1c   : > { %s49_s12 = ssub.s32 %s2191_s29, %s2896_s17  ;;  %s307_s10 = smul.u32 %s2191_s29, %s2195_s30 }
  0x1d   : > { %p2357_p4 = por %p61_p2, %p60_p1  ;;  %s2900_s18 = smov (%p42_p3, %s2898_s18), 0 }
  0x1e   : > { %2863 = sst [smem:[#allocation15_spill]] %s2900_s18  ;;  %s2902_s19 = smov (!%p42_p3, %s44_s19), %s2199_s13 }
  0x1f   : > { %s308_s11 = smul.u32 %s2900_s18, %s2896_s17  ;;  %p324_p5 = scmp.ne.s32.totalorder %s2167_s23, %s2163_s22 }
  0x20   : > { %p46_p6 = scmp.ge.s32.totalorder %s2902_s19, 2  ;;  %p325_p7 = scmp.eq.s32.totalorder %s1702_s15, 7 }
  0x21   : > { %s310_s9 = ssub.s32 %s307_s10, %s308_s11  ;;  %p330_p8 = scmp.ne.s32.totalorder %s2163_s22, %s2159_s21 }
  0x22   : > { %s2904_s19 = smov (%p46_p6, %s2902_s19), 0  ;;  %p2374_p9 = por %p325_p7, %p324_p5 }
  0x23   : > { %p331_p10 = scmp.eq.s32.totalorder %s1703_s16, 7  ;;  %s48_s30 = ssub.s32 %s2199_s13, %s2904_s19 }
  0x24   : > { %s314_s6 = sadd.s32 1, %s2167_s23  ;;  %s50_s8 = sor.u32 %s49_s12, %s48_s30 }
  0x25   : > { %s311_s5 = sor.u32 %s310_s9, %s48_s30  ;;  %p51_p11 = scmp.eq.s32.totalorder %s50_s8, 0 }
  0x26   : > { %p312_p12 = scmp.eq.s32.totalorder %s311_s5, 0  ;;  %p2381_p13 = por %p331_p10, %p330_p8 }
  0x27   : > { %s2386_s10 = scalar_select %p51_p11, %s2175_s25, %s53_s20  }
  0x28   : > { %s2389_s11 = scalar_select %p312_p12, %s2167_s23, %s314_s6  }
  0x29   : > { %p1705_p0 = scmp.ge.s32.totalorder %s2203_s14, 8 }
  0x2b   : > { %380 = sbr.rel (%p1705_p0) target bundleno = 62 (0x3e), region = 60 }
  0x30   : > { %383 = sbr.rel (!%p2357_p4) target bundleno = 62 (0x3e), region = 64  ;;  %s385_s9 = sand.u32 (%p2357_p4), 1, %s2175_s25  }
  0x31   : > { %s1707_s8 = sshll.u32 (%p2357_p4), %s2199_s13, 4  ;;  %s1706_s5 = sshll.u32 (%p2357_p4), %s385_s9, 6 }
  0x32   : > { %s389_s12 = sadd.s32 (%p2357_p4), %s2191_s29, %s1707_s8  ;;  %s2866_s0 = sld [smem:[#allocation16_spill]] (%p2357_p4) }
  0x33   : > { %s1708_s30 = sshll.u32 (%p2357_p4), %s389_s12, 3  ;;  %s387_s6 = scalar_lea.vmem (%p2357_p4), [#allocation9], %s1706_s5 }
  0x38   : > { %s391_s20 = scalar_lea.vmem %s2866_s0, %s1708_s30 }
  0x39   : > { %v434_v0 = vld [vmem:[%s391_s20] sm:$0xff]  ;;  %v436_v1 = vld [vmem:[%s391_s20 + $0x10] sm:$0xff] }
  0x3a   : > { %v438_v2 = vld [vmem:[%s391_s20 + $0x20] sm:$0xff]  ;;  %435 = vst [vmem:[%s387_s6] sm:$0xff] %v434_v0  ;;  %437 = vst [vmem:[%s387_s6 + $0x8] sm:$0xff] %v436_v1  ;;  %v440_v3 = vld [vmem:[%s391_s20 + $0x30] sm:$0xff] }
  0x3b   : > { %439 = vst [vmem:[%s387_s6 + $0x10] sm:$0xff] %v438_v2  ;;  %v442_v4 = vld [vmem:[%s391_s20 + $0x40] sm:$0xff]  ;;  %v444_v5 = vld [vmem:[%s391_s20 + $0x50] sm:$0xff]  ;;  %441 = vst [vmem:[%s387_s6 + $0x18] sm:$0xff] %v440_v3 }
  0x3c   : > { %443 = vst [vmem:[%s387_s6 + $0x20] sm:$0xff] %v442_v4  ;;  %445 = vst [vmem:[%s387_s6 + $0x28] sm:$0xff] %v444_v5  ;;  %v446_v6 = vld [vmem:[%s391_s20 + $0x60] sm:$0xff]  ;;  %v448_v7 = vld [vmem:[%s391_s20 + $0x70] sm:$0xff] }
  0x3d   : > { %447 = vst [vmem:[%s387_s6 + $0x30] sm:$0xff] %v446_v6  ;;  %449 = vst [vmem:[%s387_s6 + $0x38] sm:$0xff] %v448_v7 }
  0x3e PF: > { %p1709_p1 = scmp.ge.s32.totalorder %s2203_s14, 1  ;;  %p454_p2 = scmp.lt.s32.totalorder %s2203_s14, 9 }
  0x40   : > { %p455_p3 = pnand %p1709_p1, %p454_p2 }
  0x41   : > { %s461_s28 = sand.u32 (!%p455_p3), 1, %s2171_s24   ;;  %s2841_s9 = sand.u32 (!%p455_p3), 1, %s2163_s22  }
  0x42   : > { %458 = sbr.rel (%p455_p3) target bundleno = 2179 (0x883), region = 102  ;;  %s1710_s8 = sshll.u32 (!%p455_p3), %s461_s28, 6 }
  0x43   : > { %s1711_s5 = sshll.u32 (!%p455_p3), %s2841_s9, 6  ;;  %s463_s12 = scalar_lea.vmem (!%p455_p3), [#allocation9], %s1710_s8 }
  0x44   : > { %s2422_s24 = scalar_lea.vmem (!%p455_p3), [#allocation10], %s1711_s5  ;;  %p1712_p4 = scmp.ne.s32.totalorder (!%p455_p3), %s2183_s27, 0 }
  0x47   : > { %v2406_v8 = vld [vmem:[%s463_s12] sm:$0xff]  ;;  %v2408_v9 = vld [vmem:[%s463_s12 + $0x8] sm:$0xff]  ;;  %v2410_v10 = vld [vmem:[%s463_s12 + $0x10] sm:$0xff]  ;;  %514 = sbr.rel (%p1712_p4) target bundleno = 1763 (0x6e3), region = 110  ;;  %p1713_p5 = scmp.ne.s32.totalorder (!%p1712_p4), %s2179_s26, 0 }
  0x48   : > { %v2412_v11 = vld [vmem:[%s463_s12 + $0x18] sm:$0xff]  ;;  %v2414_v12 = vld [vmem:[%s463_s12 + $0x20] sm:$0xff]  ;;  %v2416_v13 = vld [vmem:[%s463_s12 + $0x28] sm:$0xff] }
  0x49   : > { %v2418_v14 = vld [vmem:[%s463_s12 + $0x30] sm:$0xff]  ;;  %v2420_v15 = vld [vmem:[%s463_s12 + $0x38] sm:$0xff] }
  0x4c   : > { %518 = sbr.rel (%p1713_p5) target bundleno = 91 (0x5b), region = 114 }
  0x51   : > { %vm519_vm0 = vcmask 0   ;;  %vm522_vm1 = vcmask 7168   ;;  %v2205_v16 = vmov -inf   ;;  %v2206_v17 = vmov 0.0  }
  0x52   : > { %520 = vst.msk [vmem:[#allocation2] sm:$0x1] %vm519_vm0, %v2205_v16  ;;  %521 = vst.msk [vmem:[#allocation3] sm:$0x1] %vm519_vm0, %v2206_v17 }
  0x53   : > { %523 = vst.msk [vmem:[#allocation4] sm:$0xff] %vm522_vm1, %v2206_v17  ;;  %524 = vst.msk [vmem:[#allocation4 + $0x8] sm:$0xff] %vm522_vm1, %v2206_v17 }
  0x54   : > { %525 = vst.msk [vmem:[#allocation4 + $0x10] sm:$0xff] %vm522_vm1, %v2206_v17  ;;  %526 = vst.msk [vmem:[#allocation4 + $0x18] sm:$0xff] %vm522_vm1, %v2206_v17 }
  0x55   : > { %527 = vst.msk [vmem:[#allocation4 + $0x20] sm:$0xff] %vm522_vm1, %v2206_v17  ;;  %528 = vst.msk [vmem:[#allocation4 + $0x28] sm:$0xff] %vm522_vm1, %v2206_v17 }
  0x56   : > { %529 = vst.msk [vmem:[#allocation4 + $0x30] sm:$0xff] %vm522_vm1, %v2206_v17  ;;  %530 = vst.msk [vmem:[#allocation4 + $0x38] sm:$0xff] %vm522_vm1, %v2206_v17 }
  0x57   : > { %531 = vst.msk [vmem:[#allocation5] sm:$0xff] %vm522_vm1, %v2206_v17  ;;  %532 = vst.msk [vmem:[#allocation5 + $0x8] sm:$0xff] %vm522_vm1, %v2206_v17 }
  0x58   : > { %533 = vst.msk [vmem:[#allocation5 + $0x10] sm:$0xff] %vm522_vm1, %v2206_v17  ;;  %534 = vst.msk [vmem:[#allocation5 + $0x18] sm:$0xff] %vm522_vm1, %v2206_v17 }
  0x59   : > { %535 = vst.msk [vmem:[#allocation5 + $0x20] sm:$0xff] %vm522_vm1, %v2206_v17  ;;  %536 = vst.msk [vmem:[#allocation5 + $0x28] sm:$0xff] %vm522_vm1, %v2206_v17 }
  0x5a   : > { %537 = vst.msk [vmem:[#allocation5 + $0x30] sm:$0xff] %vm522_vm1, %v2206_v17  ;;  %538 = vst.msk [vmem:[#allocation5 + $0x38] sm:$0xff] %vm522_vm1, %v2206_v17 }
  0x5b PF: > { %718 = vadd.xlane.f32.xlu1 %v2406_v8  ;;  %v2207_v18 = vmov 0.0   ;;  %vm2208_vm2 = vmmov 0   ;;  %s2867_s1 = sld [smem:[#allocation17_spill]]  ;;  %vm540_vm3 = vcmask 523264   ;;  %vm615_vm4 = vcmask 1040384   ;;  %v643_v17 = vld [vmem:[#allocation4] sm:$0xff] }
  0x5c   : > { %1803 = vmatprep.subr.mxu0 %v2207_v18  ;;  %1819 = vmatprep.mubr.msk.f32.mxu0 %vm2208_vm2, %v2207_v18  ;;  %v2209_v23 = vmov 0   ;;  %v2461_v24 = vld [vmem:[#allocation2] sm:$0x1]  ;;  %vm641_vm5 = vcmask 0   ;;  %vm701_vm6 = vcmask 7168   ;;  %v628_v46 = vlaneseq  ;;  %p1715_p6 = scmp.ne.s32.totalorder %s2179_s26, 1 }
  0x5d   : > { %1804 = vmatpush3.msra.mxu0 %v2420_v15  ;;  %2020 = vset.pattern.permute.xlu0 %v2209_v23  ;;  %v635_v5 = vld [vmem:[#allocation3] sm:$0x1]  ;;  %s2868_s2 = sld [smem:[#allocation18_spill]] (!%p1715_p6) }
  0x5e   : > { %1805 = vmatprep.subr.mxu0 %v2207_v18  ;;  %v710_v29 = vld [vmem:[#allocation5] sm:$0xff]  ;;  %v711_v31 = vld [vmem:[#allocation5 + $0x8] sm:$0xff]  ;;  %v629_v47 = vshrl.u32 %v628_v46, 7  ;;  %s2869_s4 = sld [smem:[#allocation20_spill]] (!%p1715_p6) }
  0x5f   : > { %1806 = vmatpush3.msra.mxu0 %v2418_v14  ;;  %720 = vadd.xlane.f32.xlu1 %v2408_v9  ;;  %v712_v34 = vld [vmem:[#allocation5 + $0x10] sm:$0xff]  ;;  %v713_v0 = vld [vmem:[#allocation5 + $0x18] sm:$0xff]  ;;  %s2870_s3 = sld [smem:[#allocation19_spill]] (!%p1715_p6) }
  0x60   : > { %1807 = vmatprep.subr.mxu0 %v2207_v18  ;;  %v714_v37 = vld [vmem:[#allocation5 + $0x20] sm:$0xff]  ;;  %v715_v40 = vld [vmem:[#allocation5 + $0x28] sm:$0xff]  ;;  %v630_v48 = vsub.s32 0, %v629_v47  ;;  %s2871_s30 = sld [smem:[#allocation21_spill]] (!%p1715_p6) }
  0x61   : > { %1808 = vmatpush3.msra.mxu0 %v2416_v13  ;;  %v539_v19 = vld [vmem:[%s2867_s1] sm:$0x1]  ;;  %v716_v43 = vld [vmem:[#allocation5 + $0x30] sm:$0xff]  ;;  %s2873_s12 = sld [smem:[#allocation24_spill]] (!%p1715_p6) }
  0x62   : > { %1809 = vmatprep.subr.mxu0 %v2207_v18  ;;  %s2874_s16 = sld [smem:[#allocation22_spill]] (!%p1715_p6) }
  0x63   : > { %1810 = vmatpush3.msra.mxu0 %v2414_v12  ;;  %722 = vadd.xlane.f32.xlu1 %v2410_v10  ;;  %s2880_s5 = sld [smem:[#allocation26_spill]] (!%p1715_p6) }
  0x64   : > { %1811 = vmatprep.subr.mxu0 %v2207_v18 }
  0x65   : > { %1812 = vmatpush3.msra.mxu0 %v2412_v11 }
  0x66   : > { %1813 = vmatprep.subr.mxu0 %v2207_v18  ;;  %s2872_s9 = smov (!%p1715_p6), %s2871_s30 }
  0x67   : > { %1814 = vmatpush3.msra.mxu0 %v2410_v10  ;;  %726 = vadd.xlane.f32.xlu1 %v2414_v12 }
  0x68   : > { %1815 = vmatprep.subr.mxu0 %v2207_v18 }
  0x69   : > { %1816 = vmatpush3.msra.mxu0 %v2408_v9 }
  0x6a   : > { %1817 = vmatprep.subr.mxu0 %v2207_v18 }
  0x6b   : > { %1818 = vmatpush3.msra.mxu0 %v2406_v8  ;;  %728 = vadd.xlane.f32.xlu1 %v2416_v13 }
  0x6c   : > { %1820 = vmatmul.mubr.msk.f32.vlgmr.msra.gmra.mxu0 %vm540_vm3, %v539_v19 }
  0x6f   : > { %730 = vadd.xlane.f32.xlu1 %v2418_v14 }
  0xe4   : > { %v719_v28 = vpop.xlane.xlu1 %718 }
  0xe5   : > { %v734_v30 = vadd.f32 %v719_v28, %v710_v29  ;;  %v646_v29 = vld [vmem:[#allocation4 + $0x18] sm:$0xff] }
  0xe7   : > { %742 = vst.msk [vmem:[#allocation5] sm:$0xff] %vm701_vm6, %v734_v30 }
  0xe8   : > { %v721_v32 = vpop.xlane.xlu1 %720 }
  0xe9   : > { %v735_v33 = vadd.f32 %v721_v32, %v711_v31 }
  0xeb   : > { %743 = vst.msk [vmem:[#allocation5 + $0x8] sm:$0xff] %vm701_vm6, %v735_v33  ;;  %v647_v33 = vld [vmem:[#allocation4 + $0x20] sm:$0xff] }
  0xec   : > { %v723_v35 = vpop.xlane.xlu1 %722 }
  0xed   : > { %v736_v36 = vadd.f32 %v723_v35, %v712_v34 }
  0xef   : > { %744 = vst.msk [vmem:[#allocation5 + $0x10] sm:$0xff] %vm701_vm6, %v736_v36 }
  0xf0   : > { %v727_v38 = vpop.xlane.xlu1 %726 }
  0xf1   : > { %v738_v39 = vadd.f32 %v727_v38, %v714_v37  ;;  %v648_v37 = vld [vmem:[#allocation4 + $0x28] sm:$0xff] }
  0xf3   : > { %746 = vst.msk [vmem:[#allocation5 + $0x20] sm:$0xff] %vm701_vm6, %v738_v39 }
  0xf4   : > { %v729_v41 = vpop.xlane.xlu1 %728 }
  0xf5   : > { %v739_v42 = vadd.f32 %v729_v41, %v715_v40  ;;  %v649_v41 = vld [vmem:[#allocation4 + $0x30] sm:$0xff] }
  0xf7   : > { %747 = vst.msk [vmem:[#allocation5 + $0x28] sm:$0xff] %vm701_vm6, %v739_v42 }
  0xf8   : > { %v731_v44 = vpop.xlane.xlu1 %730 }
  0xf9   : > { %v740_v45 = vadd.f32 %v731_v44, %v716_v43 }
  0xfb   : > { %748 = vst.msk [vmem:[#allocation5 + $0x30] sm:$0xff] %vm701_vm6, %v740_v45  ;;  %v650_v45 = vld [vmem:[#allocation4 + $0x38] sm:$0xff] }
 0x12c   : > { %v610_v20 = vpop.f32.mrf.mxu0 }
 0x12d   : > { %v616_v21 = vsel %vm615_vm4, %v610_v20, -inf }
 0x12e   : > { %617 = vmax.xlane.f32.xlu0 %v616_v21  ;;  %v1821_v22 = vpop.f32.mrf.mxu0  ;;  %v644_v21 = vld [vmem:[#allocation4 + $0x8] sm:$0xff] }
 0x1b7   : > { %v618_v25 = vpop.xlane.xlu0 %617 }
 0x1b8   : > { %v2464_v26 = vmax.f32 %v2461_v24, %v618_v25  ;;  %v645_v25 = vld [vmem:[#allocation4 + $0x10] sm:$0xff] }
 0x1ba   : > { %v620_v27 = vsub.f32 %v2461_v24, %v2464_v26  ;;  %750 = vst.msk [vmem:[#allocation2] sm:$0x1] %vm641_vm5, %v2464_v26  ;;  %625 = vperm.xlu0 %2020, %v2464_v26  }
 0x1bc   : > { %v621_v3 = vmul.f32 1.442695, %v620_v27 }
 0x1d9   : > { %724 = vadd.xlane.f32.xlu0 %v2412_v11 }
 0x235   : > { %v626_v49 = vpop.permute.xlu0 %625 }
 0x236   : > { %v631_v50 = vrot.slane %v626_v49, %v630_v48 }
 0x238   : > { %v632_v51 = vsub.f32 %v610_v20, %v631_v50  ;;  %v717_v50 = vld [vmem:[#allocation5 + $0x38] sm:$0xff] }
 0x23a   : > { %v633_v52 = vmul.f32 1.442695, %v632_v51 }
 0x23c   : > { %2021 = vpow2.f32 %v633_v52 }
 0x23d   : > { %2023 = vpow2.f32 %v621_v3 }
 0x249   : > { %v2022_v53 = vpop.eup %2021 }
 0x24a   : > { %v668_v54 = vrot.slane %v2022_v53, %v630_v48  ;;  %v637_v55 = vsel %vm615_vm4, %v2022_v53, 0.0  ;;  %v2024_v4 = vpop.eup %2023 }
 0x24b   : > { %638 = vadd.xlane.f32.xlu1 %v637_v55  ;;  %v655_v6 = vrot.slane %v2024_v4, %v630_v48  ;;  %v636_v7 = vmul.f32 %v2024_v4, %v635_v5 }
 0x24c   : > { %v669_v56 = vmul.f32 %v668_v54, %v2406_v8  ;;  %v670_v57 = vmul.f32 %v668_v54, %v2408_v9  ;;  %v671_v58 = vmul.f32 %v668_v54, %v2410_v10  ;;  %v672_v59 = vmul.f32 %v668_v54, %v2412_v11 }
 0x24d   : > { %v673_v60 = vmul.f32 %v668_v54, %v2414_v12  ;;  %v674_v61 = vmul.f32 %v668_v54, %v2416_v13  ;;  %v675_v62 = vmul.f32 %v668_v54, %v2418_v14  ;;  %v676_v63 = vmul.f32 %v668_v54, %v2420_v15 }
 0x24e   : > { %v657_v19 = vmul.f32 %v655_v6, %v643_v17  ;;  %v658_v23 = vmul.f32 %v655_v6, %v644_v21  ;;  %v659_v27 = vmul.f32 %v655_v6, %v645_v25  ;;  %v660_v31 = vmul.f32 %v655_v6, %v646_v29 }
 0x24f   : > { %677 = vadd.xlane.f32.xlu1 %v669_v56  ;;  %v661_v35 = vmul.f32 %v655_v6, %v647_v33  ;;  %v662_v39 = vmul.f32 %v655_v6, %v648_v37  ;;  %v663_v43 = vmul.f32 %v655_v6, %v649_v41  ;;  %v664_v47 = vmul.f32 %v655_v6, %v650_v45 }
 0x253   : > { %679 = vadd.xlane.f32.xlu1 %v670_v57 }
 0x257   : > { %681 = vadd.xlane.f32.xlu1 %v671_v58 }
 0x25b   : > { %683 = vadd.xlane.f32.xlu1 %v672_v59 }
 0x25f   : > { %685 = vadd.xlane.f32.xlu1 %v673_v60 }
 0x262   : > { %v725_v1 = vpop.xlane.xlu0 %724 }
 0x263   : > { %687 = vadd.xlane.f32.xlu1 %v674_v61  ;;  %v737_v2 = vadd.f32 %v725_v1, %v713_v0 }
 0x265   : > { %745 = vst.msk [vmem:[#allocation5 + $0x18] sm:$0xff] %vm701_vm6, %v737_v2 }
 0x267   : > { %689 = vadd.xlane.f32.xlu1 %v675_v62 }
 0x26b   : > { %691 = vadd.xlane.f32.xlu1 %v676_v63 }
 0x26f   : > { %732 = vadd.xlane.f32.xlu1 %v2420_v15 }
 0x2d4   : > { %v639_v16 = vpop.xlane.xlu1 %638 }
 0x2d5   : > { %v640_v18 = vadd.f32 %v639_v16, %v636_v7 }
 0x2d7   : > { %642 = vst.msk [vmem:[#allocation3] sm:$0x1] %vm641_vm5, %v640_v18 }
 0x2d8   : > { %v678_v20 = vpop.xlane.xlu1 %677 }
 0x2d9   : > { %v693_v22 = vadd.f32 %v678_v20, %v657_v19 }
 0x2db   : > { %702 = vst.msk [vmem:[#allocation4] sm:$0xff] %vm701_vm6, %v693_v22 }
 0x2dc   : > { %v680_v24 = vpop.xlane.xlu1 %679 }
 0x2dd   : > { %v694_v26 = vadd.f32 %v680_v24, %v658_v23 }
 0x2df   : > { %703 = vst.msk [vmem:[#allocation4 + $0x8] sm:$0xff] %vm701_vm6, %v694_v26 }
 0x2e0   : > { %v682_v28 = vpop.xlane.xlu1 %681 }
 0x2e1   : > { %v695_v30 = vadd.f32 %v682_v28, %v659_v27 }
 0x2e3   : > { %704 = vst.msk [vmem:[#allocation4 + $0x10] sm:$0xff] %vm701_vm6, %v695_v30 }
 0x2e4   : > { %v684_v32 = vpop.xlane.xlu1 %683 }
 0x2e5   : > { %v696_v34 = vadd.f32 %v684_v32, %v660_v31 }
 0x2e7   : > { %705 = vst.msk [vmem:[#allocation4 + $0x18] sm:$0xff] %vm701_vm6, %v696_v34 }
 0x2e8   : > { %v686_v36 = vpop.xlane.xlu1 %685 }
 0x2e9   : > { %v697_v38 = vadd.f32 %v686_v36, %v661_v35 }
 0x2eb   : > { %706 = vst.msk [vmem:[#allocation4 + $0x20] sm:$0xff] %vm701_vm6, %v697_v38 }
 0x2ec   : > { %v688_v40 = vpop.xlane.xlu1 %687 }
 0x2ed   : > { %v698_v42 = vadd.f32 %v688_v40, %v662_v39 }
 0x2ef   : > { %707 = vst.msk [vmem:[#allocation4 + $0x28] sm:$0xff] %vm701_vm6, %v698_v42 }
 0x2f0   : > { %v690_v44 = vpop.xlane.xlu1 %689 }
 0x2f1   : > { %v699_v46 = vadd.f32 %v690_v44, %v663_v43 }
 0x2f3   : > { %708 = vst.msk [vmem:[#allocation4 + $0x30] sm:$0xff] %vm701_vm6, %v699_v46 }
 0x2f4   : > { %v692_v48 = vpop.xlane.xlu1 %691 }
 0x2f5   : > { %v700_v49 = vadd.f32 %v692_v48, %v664_v47 }
 0x2f7   : > { %709 = vst.msk [vmem:[#allocation4 + $0x38] sm:$0xff] %vm701_vm6, %v700_v49  ;;  %754 = sbr.rel (%p1715_p6) target bundleno = 1763 (0x6e3), region = 118 }
 0x2f8   : > { %v733_v51 = vpop.xlane.xlu1 %732 }
 0x2f9   : > { %v741_v52 = vadd.f32 %v733_v51, %v717_v50 }
 0x2fb   : > { %749 = vst.msk [vmem:[#allocation5 + $0x38] sm:$0xff] %vm701_vm6, %v741_v52 }
 0x2fc   : > { %v1716_v53 = vld [vmem:[#allocation3] ss:$0 sm:$0xff]  ;;  %v761_v56 = vld [vmem:[#allocation4 + $0x30] sm:$0xff]  ;;  %v760_v58 = vld [vmem:[#allocation4 + $0x28] sm:$0xff]  ;;  %vm900_vm7 = vcmask 261120   ;;  %vm1402_vm8 = vcmask 516096  }
 0x2fd   : > { %2027 = vrcp.f32 %v1716_v53  ;;  %v779_v54 = vld [vmem:[%s2868_s2] sm:$0xff]  ;;  %v757_v1 = vld [vmem:[#allocation4 + $0x10] sm:$0xff]  ;;  %v756_v3 = vld [vmem:[#allocation4 + $0x8] sm:$0xff] }
 0x2fe   : > { %1838 = vmatprep.mubr.msk.f32.mxu0 %vm540_vm3, %v779_v54  ;;  %v762_v55 = vld [vmem:[#allocation4 + $0x38] sm:$0xff]  ;;  %v759_v61 = vld [vmem:[#allocation4 + $0x20] sm:$0xff]  ;;  %v781_v17 = vld [vmem:[%s2868_s2 + $0x10] sm:$0xff] }
 0x2ff   : > { %v758_v63 = vld [vmem:[#allocation4 + $0x18] sm:$0xff]  ;;  %v755_v5 = vld [vmem:[#allocation4] sm:$0xff]  ;;  %v785_v24 = vld [vmem:[%s2870_s3 + $0x10] sm:$0xff] }
 0x300   : > { %v780_v16 = vld [vmem:[%s2868_s2 + $0x8] sm:$0xff]  ;;  %v782_v18 = vld [vmem:[%s2868_s2 + $0x18] sm:$0xff]  ;;  %v884_v19 = vld [vmem:[%s2869_s4] sm:$0xff]  ;;  %s2875_s2 = sld [smem:[#allocation23_spill]] }
 0x301   : > { %1852 = vmatprep.mubr.msk.f32.mxu1 %vm900_vm7, %v884_v19  ;;  %v786_v22 = vld [vmem:[%s2870_s3 + $0x18] sm:$0xff]  ;;  %v784_v26 = vld [vmem:[%s2870_s3 + $0x8] sm:$0xff]  ;;  %v783_v29 = vld [vmem:[%s2870_s3] sm:$0xff] }
 0x302   : > { %v885_v32 = vld [vmem:[%s2869_s4 + $0x8] sm:$0xff]  ;;  %v886_v33 = vld [vmem:[%s2869_s4 + $0x10] sm:$0xff]  ;;  %v887_v34 = vld [vmem:[%s2869_s4 + $0x18] sm:$0xff] }
 0x303   : > { %v888_v35 = vld [vmem:[%s2869_s4 + $0x20] sm:$0xff]  ;;  %v889_v36 = vld [vmem:[%s2869_s4 + $0x28] sm:$0xff]  ;;  %v890_v37 = vld [vmem:[%s2869_s4 + $0x30] sm:$0xff] }
 0x304   : > { %v891_v38 = vld [vmem:[%s2869_s4 + $0x38] sm:$0xff]  ;;  %v893_v39 = vld [vmem:[%s2871_s30 + $0x8] sm:$0xff]  ;;  %v892_v41 = vld [vmem:[%s2872_s9] sm:$0xff]  ;;  %s2876_s30 = sld [smem:[#allocation25_spill]] }
 0x305   : > { %v895_v45 = vld [vmem:[%s2872_s9 + $0x18] sm:$0xff]  ;;  %v894_v47 = vld [vmem:[%s2872_s9 + $0x10] sm:$0xff]  ;;  %v897_v54 = vld [vmem:[%s2872_s9 + $0x28] sm:$0xff] }
 0x30a   : > { %v2028_v57 = vpop.eup %2027  ;;  %s2877_s15 = smov %s2876_s30 }
 0x30b   : > { %v778_v59 = vmul.f32 %v2028_v57, %v762_v55  ;;  %v777_v60 = vmul.f32 %v2028_v57, %v761_v56  ;;  %v776_v62 = vmul.f32 %v2028_v57, %v760_v58  ;;  %v775_v0 = vmul.f32 %v2028_v57, %v759_v61  ;;  %v896_v56 = vld [vmem:[%s2872_s9 + $0x20] sm:$0xff] }
 0x30c   : > { %v774_v2 = vmul.f32 %v2028_v57, %v758_v63  ;;  %v773_v4 = vmul.f32 %v2028_v57, %v757_v1  ;;  %v772_v6 = vmul.f32 %v2028_v57, %v756_v3  ;;  %v771_v7 = vmul.f32 %v2028_v57, %v755_v5 }
 0x30d   : > { %1822 = vmatprep.subr.mxu0 %v778_v59 }
 0x30e   : > { %1823 = vmatpush3.msra.mxu0 %v778_v59 }
 0x30f   : > { %1824 = vmatprep.subr.mxu0 %v777_v60 }
 0x310   : > { %1825 = vmatpush3.msra.mxu0 %v777_v60 }
 0x311   : > { %1826 = vmatprep.subr.mxu0 %v776_v62 }
 0x312   : > { %1827 = vmatpush3.msra.mxu0 %v776_v62 }
 0x313   : > { %1828 = vmatprep.subr.mxu0 %v775_v0 }
 0x314   : > { %1829 = vmatpush3.msra.mxu0 %v775_v0  ;;  %v899_v0 = vld [vmem:[%s2872_s9 + $0x38] sm:$0xff] }
 0x315   : > { %1830 = vmatprep.subr.mxu0 %v774_v2 }
 0x316   : > { %1831 = vmatpush3.msra.mxu0 %v774_v2  ;;  %v898_v2 = vld [vmem:[%s2872_s9 + $0x30] sm:$0xff] }
 0x317   : > { %1832 = vmatprep.subr.mxu0 %v773_v4 }
 0x318   : > { %1833 = vmatpush3.msra.mxu0 %v773_v4 }
 0x319   : > { %1834 = vmatprep.subr.mxu0 %v772_v6 }
 0x31a   : > { %1835 = vmatpush3.msra.mxu0 %v772_v6 }
 0x31b   : > { %1836 = vmatprep.subr.mxu0 %v771_v7 }
 0x31c   : > { %1837 = vmatpush3.msra.mxu0 %v771_v7 }
 0x31d   : > { %1839 = vmatmul.mubr.msk.f32.vlgmr.msra.gmra.mxu0 %vm540_vm3, %v780_v16 }
 0x31e   : > { %1841 = vmatprep.mubr.msk.f32.mxu0 %vm540_vm3, %v781_v17 }
 0x321   : > { %1842 = vmatmul.mubr.msk.f32.gmra.mxu0 %vm540_vm3, %v782_v18  ;;  %v1213_v18 = vld [vmem:[%s2873_s12] sm:$0xff] }
 0x3dd   : > { %v1840_v20 = vpop.f32.mrf.mxu0 }
 0x3de   : > { %v871_v30 = vadd.f32 %v1840_v20, %v784_v26 }
 0x3df   : > { %v865_v21 = vpop.f32.mrf.mxu0 }
 0x3e0   : > { %v866_v31 = vadd.f32 %v865_v21, %v783_v29 }
 0x3e1   : > { %v1843_v23 = vpop.f32.mrf.mxu0 }
 0x3e2   : > { %v881_v25 = vadd.f32 %v1843_v23, %v786_v22 }
 0x3e3   : > { %v875_v27 = vpop.f32.mrf.mxu0 }
 0x3e4   : > { %v876_v28 = vadd.f32 %v875_v27, %v785_v24  ;;  %1844 = vmatprep.subr.mxu1 %v881_v25 }
 0x3e5   : > { %1845 = vmatpush3.msra.mxu1 %v881_v25 }
 0x3e6   : > { %1846 = vmatprep.subr.mxu1 %v876_v28 }
 0x3e7   : > { %1847 = vmatpush3.msra.mxu1 %v876_v28 }
 0x3e8   : > { %1848 = vmatprep.subr.mxu1 %v871_v30 }
 0x3e9   : > { %1849 = vmatpush3.msra.mxu1 %v871_v30 }
 0x3ea   : > { %1850 = vmatprep.subr.mxu1 %v866_v31 }
 0x3eb   : > { %1851 = vmatpush3.msra.mxu1 %v866_v31 }
 0x3ec   : > { %1853 = vmatmul.mubr.msk.f32.vlgmr.msra.gmra.mxu1 %vm900_vm7, %v885_v32 }
 0x3ed   : > { %1855 = vmatprep.mubr.msk.f32.mxu1 %vm900_vm7, %v886_v33 }
 0x3f0   : > { %1856 = vmatmul.mubr.msk.f32.gmra.mxu1 %vm900_vm7, %v887_v34 }
 0x3f1   : > { %1858 = vmatprep.mubr.msk.f32.mxu1 %vm900_vm7, %v888_v35 }
 0x3f4   : > { %1859 = vmatmul.mubr.msk.f32.gmra.mxu1 %vm900_vm7, %v889_v36 }
 0x3f5   : > { %1861 = vmatprep.mubr.msk.f32.mxu1 %vm900_vm7, %v890_v37 }
 0x3f8   : > { %1862 = vmatmul.mubr.msk.f32.gmra.mxu1 %vm900_vm7, %v891_v38 }
 0x3f9   : > { %1880 = vmatprep.mubr.msk.f32.mxu1 %vm540_vm3, %v1213_v18  ;;  %v1105_v18 = vld [vmem:[%s2874_s16 + $0x20] sm:$0xff] }
 0x4ac   : > { %v1854_v40 = vpop.f32.mrf.mxu1 }
 0x4ad   : > { %v997_v43 = vadd.f32 %v1854_v40, %v893_v39 }
 0x4ae   : > { %v991_v42 = vpop.f32.mrf.mxu1 }
 0x4af   : > { %v992_v44 = vadd.f32 %v991_v42, %v892_v41  ;;  %v1031_v50 = vsel %vm701_vm6, %v997_v43, 0.0 }
 0x4b0   : > { %v1857_v46 = vpop.f32.mrf.mxu1 }
 0x4b1   : > { %v1030_v48 = vsel %vm701_vm6, %v992_v44, 0.0  ;;  %v1007_v51 = vadd.f32 %v1857_v46, %v895_v45 }
 0x4b2   : > { %v1001_v49 = vpop.f32.mrf.mxu1  ;;  %v1032_v53 = vadd.f32 %v1031_v50, %v1030_v48 }
 0x4b3   : > { %v1002_v52 = vadd.f32 %v1001_v49, %v894_v47  ;;  %v1035_v60 = vsel %vm701_vm6, %v1007_v51, 0.0 }
 0x4b4   : > { %v1860_v55 = vpop.f32.mrf.mxu1 }
 0x4b5   : > { %v1033_v57 = vsel %vm701_vm6, %v1002_v52, 0.0  ;;  %v1017_v61 = vadd.f32 %v1860_v55, %v897_v54 }
 0x4b6   : > { %v1034_v58 = vadd.f32 %v1033_v57, %v1032_v53  ;;  %v1011_v59 = vpop.f32.mrf.mxu1 }
 0x4b7   : > { %v1012_v62 = vadd.f32 %v1011_v59, %v896_v56  ;;  %v1039_v6 = vsel %vm701_vm6, %v1017_v61, 0.0 }
 0x4b8   : > { %v1036_v63 = vadd.f32 %v1035_v60, %v1034_v58  ;;  %v1863_v1 = vpop.f32.mrf.mxu1 }
 0x4b9   : > { %v1037_v3 = vsel %vm701_vm6, %v1012_v62, 0.0  ;;  %v1027_v7 = vadd.f32 %v1863_v1, %v899_v0 }
 0x4ba   : > { %v1038_v4 = vadd.f32 %v1037_v3, %v1036_v63  ;;  %v1021_v5 = vpop.f32.mrf.mxu1 }
 0x4bb   : > { %v1022_v16 = vadd.f32 %v1021_v5, %v898_v2  ;;  %v1043_v21 = vsel %vm701_vm6, %v1027_v7, 0.0  ;;  %v1101_v5 = vld [vmem:[%s2874_s16] sm:$0xff] }
 0x4bc   : > { %v1040_v17 = vadd.f32 %v1039_v6, %v1038_v4  ;;  %v1102_v6 = vld [vmem:[%s2874_s16 + $0x8] sm:$0xff] }
 0x4bd   : > { %v1041_v19 = vsel %vm701_vm6, %v1022_v16, 0.0 }
 0x4be   : > { %v1042_v20 = vadd.f32 %v1041_v19, %v1040_v17  ;;  %v1104_v17 = vld [vmem:[%s2874_s16 + $0x18] sm:$0xff] }
 0x4c0   : > { %v1044_v22 = vadd.f32 %v1043_v21, %v1042_v20 }
 0x4c2   : > { %v1045_v23 = vrot.slane %v1044_v22, 4 }
 0x4c4   : > { %v1046_v24 = vadd.f32 %v1045_v23, %v1044_v22  ;;  %v1106_v23 = vld [vmem:[%s2874_s16 + $0x28] sm:$0xff] }
 0x4c6   : > { %v1047_v25 = vrot.slane %v1046_v24, 2 }
 0x4c8   : > { %v1048_v26 = vadd.f32 %v1047_v25, %v1046_v24  ;;  %v1107_v24 = vld [vmem:[%s2874_s16 + $0x30] sm:$0xff]  ;;  %v1108_v25 = vld [vmem:[%s2874_s16 + $0x38] sm:$0xff] }
 0x4ca   : > { %v1049_v27 = vrot.slane %v1048_v26, 1 }
 0x4cc   : > { %v1050_v28 = vadd.f32 %v1049_v27, %v1048_v26 }
 0x4ce   : > { %v1052_v29 = vmul.f32 0.015625, %v1050_v28 }
 0x4d0   : > { %v1053_v30 = vsub.f32 %v992_v44, %v1052_v29  ;;  %v1054_v31 = vsub.f32 %v997_v43, %v1052_v29  ;;  %v1055_v32 = vsub.f32 %v1002_v52, %v1052_v29  ;;  %v1056_v33 = vsub.f32 %v1007_v51, %v1052_v29 }
 0x4d1   : > { %v1057_v34 = vsub.f32 %v1012_v62, %v1052_v29  ;;  %v1058_v38 = vsub.f32 %v1017_v61, %v1052_v29  ;;  %v1059_v45 = vsub.f32 %v1022_v16, %v1052_v29  ;;  %v1060_v44 = vsub.f32 %v1027_v7, %v1052_v29  ;;  %v1103_v16 = vld [vmem:[%s2874_s16 + $0x10] sm:$0xff] }
 0x4d2   : > { %v1061_v35 = vmul.f32 %v1053_v30, %v1053_v30  ;;  %v1062_v36 = vmul.f32 %v1054_v31, %v1054_v31  ;;  %v1063_v37 = vmul.f32 %v1055_v32, %v1055_v32  ;;  %v1064_v39 = vmul.f32 %v1056_v33, %v1056_v33 }
 0x4d3   : > { %v1065_v46 = vmul.f32 %v1057_v34, %v1057_v34  ;;  %v1066_v43 = vmul.f32 %v1058_v38, %v1058_v38  ;;  %v1067_v51 = vmul.f32 %v1059_v45, %v1059_v45  ;;  %v1068_v54 = vmul.f32 %v1060_v44, %v1060_v44 }
 0x4d4   : > { %v1069_v40 = vsel %vm701_vm6, %v1061_v35, 0.0  ;;  %v1070_v41 = vsel %vm701_vm6, %v1062_v36, 0.0  ;;  %v1072_v47 = vsel %vm701_vm6, %v1063_v37, 0.0  ;;  %v1074_v49 = vsel %vm701_vm6, %v1064_v39, 0.0  ;;  %v1124_v39 = vld [vmem:[%s2875_s2 + $0x38] sm:$0xff] }
 0x4d5   : > { %v1071_v42 = vadd.f32 %v1070_v41, %v1069_v40  ;;  %v1076_v52 = vsel %vm701_vm6, %v1065_v46, 0.0  ;;  %v1078_v55 = vsel %vm701_vm6, %v1066_v43, 0.0  ;;  %v1080_v57 = vsel %vm701_vm6, %v1067_v51, 0.0  ;;  %v1118_v46 = vld [vmem:[%s2875_s2 + $0x8] sm:$0xff] }
 0x4d6   : > { %v1082_v59 = vsel %vm701_vm6, %v1068_v54, 0.0 }
 0x4d7   : > { %v1073_v48 = vadd.f32 %v1072_v47, %v1071_v42 }
 0x4d9   : > { %v1075_v50 = vadd.f32 %v1074_v49, %v1073_v48 }
 0x4db   : > { %v1077_v53 = vadd.f32 %v1076_v52, %v1075_v50 }
 0x4dd   : > { %v1079_v56 = vadd.f32 %v1078_v55, %v1077_v53 }
 0x4df   : > { %v1081_v58 = vadd.f32 %v1080_v57, %v1079_v56 }
 0x4e1   : > { %v1083_v60 = vadd.f32 %v1082_v59, %v1081_v58 }
 0x4e3   : > { %v1084_v61 = vrot.slane %v1083_v60, 4 }
 0x4e5   : > { %v1085_v62 = vadd.f32 %v1084_v61, %v1083_v60 }
 0x4e7   : > { %v1086_v63 = vrot.slane %v1085_v62, 2 }
 0x4e9   : > { %v1087_v0 = vadd.f32 %v1086_v63, %v1085_v62 }
 0x4eb   : > { %v1088_v1 = vrot.slane %v1087_v0, 1 }
 0x4ed   : > { %v1089_v2 = vadd.f32 %v1088_v1, %v1087_v0 }
 0x4ef   : > { %v1090_v3 = vmul.f32 0.015625, %v1089_v2 }
 0x4f1   : > { %v1091_v4 = vadd.f32 1e-05, %v1090_v3 }
 0x4f3   : > { %2029 = vrsqrt.f32 %v1091_v4 }
 0x500   : > { %v2030_v7 = vpop.eup %2029 }
 0x501   : > { %v1093_v19 = vmul.f32 %v2030_v7, %v1053_v30  ;;  %v1094_v20 = vmul.f32 %v2030_v7, %v1054_v31  ;;  %v1095_v21 = vmul.f32 %v2030_v7, %v1055_v32  ;;  %v1096_v22 = vmul.f32 %v2030_v7, %v1056_v33  ;;  %v1120_v30 = vld [vmem:[%s2875_s2 + $0x18] sm:$0xff]  ;;  %v1121_v31 = vld [vmem:[%s2875_s2 + $0x20] sm:$0xff]  ;;  %v1119_v32 = vld [vmem:[%s2875_s2 + $0x10] sm:$0xff] }
 0x502   : > { %v1097_v26 = vmul.f32 %v2030_v7, %v1057_v34  ;;  %v1098_v27 = vmul.f32 %v2030_v7, %v1058_v38  ;;  %v1099_v28 = vmul.f32 %v2030_v7, %v1059_v45  ;;  %v1100_v29 = vmul.f32 %v2030_v7, %v1060_v44  ;;  %v1122_v34 = vld [vmem:[%s2875_s2 + $0x28] sm:$0xff]  ;;  %v1123_v38 = vld [vmem:[%s2875_s2 + $0x30] sm:$0xff]  ;;  %v1117_v44 = vld [vmem:[%s2875_s2] sm:$0xff] }
 0x503   : > { %v1109_v33 = vmul.f32 %v1101_v5, %v1093_v19  ;;  %v1110_v35 = vmul.f32 %v1102_v6, %v1094_v20  ;;  %v1111_v36 = vmul.f32 %v1103_v16, %v1095_v21  ;;  %v1112_v37 = vmul.f32 %v1104_v17, %v1096_v22  ;;  %v1196_v22 = vld [vmem:[#allocation5 + $0x38] sm:$0xff] }
 0x504   : > { %v1113_v40 = vmul.f32 %v1105_v18, %v1097_v26  ;;  %v1114_v41 = vmul.f32 %v1106_v23, %v1098_v27  ;;  %v1115_v42 = vmul.f32 %v1107_v24, %v1099_v28  ;;  %v1116_v45 = vmul.f32 %v1108_v25, %v1100_v29  ;;  %v1195_v24 = vld [vmem:[#allocation5 + $0x30] sm:$0xff]  ;;  %v1194_v28 = vld [vmem:[#allocation5 + $0x28] sm:$0xff] }
 0x505   : > { %v1128_v47 = vadd.f32 %v1120_v30, %v1112_v37  ;;  %v1127_v48 = vadd.f32 %v1119_v32, %v1111_v36  ;;  %v1126_v53 = vadd.f32 %v1118_v46, %v1110_v35  ;;  %v1125_v57 = vadd.f32 %v1117_v44, %v1109_v33  ;;  %v1193_v32 = vld [vmem:[#allocation5 + $0x20] sm:$0xff]  ;;  %v1190_v46 = vld [vmem:[#allocation5 + $0x8] sm:$0xff] }
 0x506   : > { %v1129_v43 = vadd.f32 %v1121_v31, %v1113_v40  ;;  %v1130_v49 = vadd.f32 %v1122_v34, %v1114_v41  ;;  %v1131_v50 = vadd.f32 %v1123_v38, %v1115_v42  ;;  %v1132_v51 = vadd.f32 %v1124_v39, %v1116_v45  ;;  %v1192_v34 = vld [vmem:[#allocation5 + $0x18] sm:$0xff]  ;;  %v1191_v41 = vld [vmem:[#allocation5 + $0x10] sm:$0xff]  ;;  %v1189_v44 = vld [vmem:[#allocation5] sm:$0xff] }
 0x507   : > { %v1732_v52 = vmul.f32 -1.442695, %v1128_v47  ;;  %v1731_v59 = vmul.f32 -1.442695, %v1127_v48  ;;  %v1730_v60 = vmul.f32 -1.442695, %v1126_v53 }
 0x508   : > { %v1733_v54 = vmul.f32 -1.442695, %v1129_v43  ;;  %v1734_v55 = vmul.f32 -1.442695, %v1130_v49  ;;  %v1735_v56 = vmul.f32 -1.442695, %v1131_v50 }
 0x509   : > { %v1736_v58 = vmul.f32 -1.442695, %v1132_v51  ;;  %2031 = vpow2.f32 %v1732_v52  ;;  %v1729_v61 = vmul.f32 -1.442695, %v1125_v57  ;;  %v1204_v26 = vmul.f32 0.00390625, %v1196_v22 }
 0x50a   : > { %2033 = vpow2.f32 %v1733_v54  ;;  %v1203_v30 = vmul.f32 0.00390625, %v1195_v24  ;;  %v1202_v36 = vmul.f32 0.00390625, %v1194_v28  ;;  %v1201_v40 = vmul.f32 0.00390625, %v1193_v32  ;;  %v1214_v54 = vld [vmem:[%s2873_s12 + $0x8] sm:$0xff] }
 0x50b   : > { %2035 = vpow2.f32 %v1734_v55  ;;  %v1200_v45 = vmul.f32 0.00390625, %v1192_v34  ;;  %v1199_v48 = vmul.f32 0.00390625, %v1191_v41  ;;  %v1198_v49 = vmul.f32 0.00390625, %v1190_v46  ;;  %v1215_v55 = vld [vmem:[%s2873_s12 + $0x10] sm:$0xff] }
 0x50c   : > { %2037 = vpow2.f32 %v1735_v56  ;;  %v1197_v51 = vmul.f32 0.00390625, %v1189_v44  ;;  %v1216_v56 = vld [vmem:[%s2873_s12 + $0x18] sm:$0xff]  ;;  %v2210_v57 = vmov 0  }
 0x50d   : > { %2039 = vpow2.f32 %v1736_v58  ;;  %2026 = vset.pattern.permute.xlu1 %v2210_v57  ;;  %2025 = vset.pattern.permute.xlu0 %v2210_v57 }
 0x50e   : > { %2041 = vpow2.f32 %v1731_v59  ;;  %v1217_v59 = vld [vmem:[%s2876_s30] sm:$0xff]  ;;  %s2878_s30 = sld [smem:[#allocation27_spill]] }
 0x50f   : > { %2043 = vpow2.f32 %v1730_v60  ;;  %v1218_v60 = vld [vmem:[%s2877_s15 + $0x8] sm:$0xff] }
 0x510   : > { %2045 = vpow2.f32 %v1729_v61 }
 0x514   : > { %s2879_s20 = smov %s2878_s30 }
 0x516   : > { %v2032_v62 = vpop.eup %2031 }
 0x517   : > { %v2034_v63 = vpop.eup %2033  ;;  %v1160_v0 = vadd.f32 1.0, %v2032_v62  ;;  %v1220_v62 = vld [vmem:[%s2877_s15 + $0x18] sm:$0xff] }
 0x518   : > { %v2036_v1 = vpop.eup %2035  ;;  %v1161_v2 = vadd.f32 1.0, %v2034_v63 }
 0x519   : > { %v2038_v3 = vpop.eup %2037  ;;  %v1162_v4 = vadd.f32 1.0, %v2036_v1  ;;  %2047 = vrcp.f32 %v1160_v0  ;;  %v1219_v1 = vld [vmem:[%s2877_s15 + $0x10] sm:$0xff] }
 0x51a   : > { %v2040_v5 = vpop.eup %2039  ;;  %v1163_v6 = vadd.f32 1.0, %v2038_v3  ;;  %2049 = vrcp.f32 %v1161_v2 }
 0x51b   : > { %v2042_v7 = vpop.eup %2041  ;;  %v1164_v16 = vadd.f32 1.0, %v2040_v5  ;;  %2051 = vrcp.f32 %v1162_v4 }
 0x51c   : > { %v2044_v17 = vpop.eup %2043  ;;  %2053 = vrcp.f32 %v1163_v6  ;;  %v1159_v18 = vadd.f32 1.0, %v2042_v7 }
 0x51d   : > { %v2046_v19 = vpop.eup %2045  ;;  %2055 = vrcp.f32 %v1164_v16  ;;  %v1158_v20 = vadd.f32 1.0, %v2044_v17 }
 0x51e   : > { %2057 = vrcp.f32 %v1159_v18  ;;  %v1157_v21 = vadd.f32 1.0, %v2046_v19 }
 0x51f   : > { %2059 = vrcp.f32 %v1158_v20 }
 0x520   : > { %2061 = vrcp.f32 %v1157_v21 }
 0x526   : > { %v2048_v23 = vpop.eup %2047 }
 0x527   : > { %v2050_v25 = vpop.eup %2049  ;;  %1184 = vst.msk [vmem:[#allocation6 + $0x18] sm:$0xff] %vm701_vm6, %v2048_v23  ;;  %v1208_v43 = vmul.f32 %v2048_v23, %v1200_v45 }
 0x528   : > { %v2052_v27 = vpop.eup %2051  ;;  %1185 = vst.msk [vmem:[#allocation6 + $0x20] sm:$0xff] %vm701_vm6, %v2050_v25  ;;  %v1209_v47 = vmul.f32 %v2050_v25, %v1201_v40 }
 0x529   : > { %v2054_v29 = vpop.eup %2053  ;;  %1186 = vst.msk [vmem:[#allocation6 + $0x28] sm:$0xff] %vm701_vm6, %v2052_v27  ;;  %v1210_v42 = vmul.f32 %v2052_v27, %v1202_v36 }
 0x52a   : > { %v2056_v31 = vpop.eup %2055  ;;  %1187 = vst.msk [vmem:[#allocation6 + $0x30] sm:$0xff] %vm701_vm6, %v2054_v29  ;;  %v1211_v39 = vmul.f32 %v2054_v29, %v1203_v30 }
 0x52b   : > { %v2058_v33 = vpop.eup %2057  ;;  %1188 = vst.msk [vmem:[#allocation6 + $0x38] sm:$0xff] %vm701_vm6, %v2056_v31  ;;  %v1212_v35 = vmul.f32 %v2056_v31, %v1204_v26 }
 0x52c   : > { %v2060_v37 = vpop.eup %2059  ;;  %1183 = vst.msk [vmem:[#allocation6 + $0x10] sm:$0xff] %vm701_vm6, %v2058_v33  ;;  %v1207_v50 = vmul.f32 %v2058_v33, %v1199_v48 }
 0x52d   : > { %v2062_v38 = vpop.eup %2061  ;;  %1864 = vmatprep.subr.mxu1 %v1212_v35  ;;  %1182 = vst.msk [vmem:[#allocation6 + $0x8] sm:$0xff] %vm701_vm6, %v2060_v37  ;;  %v1206_v52 = vmul.f32 %v2060_v37, %v1198_v49 }
 0x52e   : > { %1865 = vmatpush3.msra.mxu1 %v1212_v35  ;;  %1181 = vst.msk [vmem:[#allocation6] sm:$0xff] %vm701_vm6, %v2062_v38  ;;  %v1205_v53 = vmul.f32 %v2062_v38, %v1197_v51 }
 0x52f   : > { %1866 = vmatprep.subr.mxu1 %v1211_v39 }
 0x530   : > { %1867 = vmatpush3.msra.mxu1 %v1211_v39 }
 0x531   : > { %1868 = vmatprep.subr.mxu1 %v1210_v42 }
 0x532   : > { %1869 = vmatpush3.msra.mxu1 %v1210_v42 }
 0x533   : > { %1870 = vmatprep.subr.mxu1 %v1209_v47 }
 0x534   : > { %1871 = vmatpush3.msra.mxu1 %v1209_v47 }
 0x535   : > { %1872 = vmatprep.subr.mxu1 %v1208_v43 }
 0x536   : > { %1873 = vmatpush3.msra.mxu1 %v1208_v43 }
 0x537   : > { %1874 = vmatprep.subr.mxu1 %v1207_v50 }
 0x538   : > { %1875 = vmatpush3.msra.mxu1 %v1207_v50 }
 0x539   : > { %1876 = vmatprep.subr.mxu1 %v1206_v52 }
 0x53a   : > { %1877 = vmatpush3.msra.mxu1 %v1206_v52 }
 0x53b   : > { %1878 = vmatprep.subr.mxu1 %v1205_v53 }
 0x53c   : > { %1879 = vmatpush3.msra.mxu1 %v1205_v53  ;;  %v1404_v53 = vld [vmem:[%s2878_s30] sm:$0xff] }
 0x53d   : > { %1881 = vmatmul.mubr.msk.f32.vlgmr.msra.gmra.mxu1 %vm540_vm3, %v1214_v54 }
 0x53e   : > { %1883 = vmatprep.mubr.msk.f32.mxu1 %vm540_vm3, %v1215_v55  ;;  %v1406_v55 = vld [vmem:[%s2879_s20 + $0x10] sm:$0xff] }
 0x541   : > { %1884 = vmatmul.mubr.msk.f32.gmra.mxu1 %vm540_vm3, %v1216_v56 }
 0x5fd   : > { %v1882_v58 = vpop.f32.mrf.mxu1 }
 0x5fe   : > { %v1305_v2 = vadd.f32 %v1882_v58, %v1218_v60  ;;  %v1405_v58 = vld [vmem:[%s2879_s20 + $0x8] sm:$0xff] }
 0x5ff   : > { %v1299_v61 = vpop.f32.mrf.mxu1 }
 0x600   : > { %v1300_v63 = vadd.f32 %v1299_v61, %v1217_v59  ;;  %v1319_v7 = vsel %vm701_vm6, %v1305_v2, -inf  ;;  %v1407_v61 = vld [vmem:[%s2879_s20 + $0x18] sm:$0xff] }
 0x601   : > { %v1885_v0 = vpop.f32.mrf.mxu1 }
 0x602   : > { %v1315_v3 = vadd.f32 %v1885_v0, %v1220_v62  ;;  %v1318_v5 = vsel %vm701_vm6, %v1300_v63, -inf }
 0x603   : > { %v1309_v4 = vpop.f32.mrf.mxu1  ;;  %v1322_v18 = vmax.f32 %v1318_v5, %v1319_v7 }
 0x604   : > { %v1310_v6 = vadd.f32 %v1309_v4, %v1219_v1  ;;  %v1321_v16 = vsel %vm701_vm6, %v1315_v3, -inf }
 0x606   : > { %v1320_v17 = vsel %vm701_vm6, %v1310_v6, -inf }
 0x607   : > { %v1323_v19 = vmax.f32 %v1320_v17, %v1321_v16 }
 0x609   : > { %v1324_v20 = vmax.f32 %v1322_v18, %v1323_v19 }
 0x60b   : > { %v1325_v21 = vrot.slane %v1324_v20, 4 }
 0x60d   : > { %v1326_v22 = vmax.f32 %v1324_v20, %v1325_v21 }
 0x60f   : > { %v1327_v23 = vrot.slane %v1326_v22, 2 }
 0x611   : > { %v1328_v24 = vmax.f32 %v1326_v22, %v1327_v23  ;;  %v1361_v23 = vld [vmem:[%s2880_s5] sm:$0xff] }
 0x613   : > { %v1329_v25 = vrot.slane %v1328_v24, 1 }
 0x615   : > { %v1330_v26 = vmax.f32 %v1328_v24, %v1329_v25  ;;  %v1363_v25 = vld [vmem:[%s2880_s5 + $0x10] sm:$0xff] }
 0x617   : > { %v1331_v27 = vsub.f32 %v1300_v63, %v1330_v26  ;;  %v1332_v28 = vsub.f32 %v1305_v2, %v1330_v26  ;;  %v1333_v29 = vsub.f32 %v1310_v6, %v1330_v26  ;;  %v1334_v30 = vsub.f32 %v1315_v3, %v1330_v26  ;;  %v1362_v26 = vld [vmem:[%s2880_s5 + $0x8] sm:$0xff] }
 0x619   : > { %v1335_v31 = vmul.f32 1.442695, %v1331_v27  ;;  %v1337_v32 = vmul.f32 1.442695, %v1332_v28  ;;  %v1339_v33 = vmul.f32 1.442695, %v1333_v29 }
 0x61a   : > { %v1341_v35 = vmul.f32 1.442695, %v1334_v30  ;;  %v1364_v28 = vld [vmem:[%s2880_s5 + $0x18] sm:$0xff] }
 0x61b   : > { %2063 = vpow2.f32 %v1335_v31 }
 0x61c   : > { %2065 = vpow2.f32 %v1337_v32 }
 0x61d   : > { %2067 = vpow2.f32 %v1339_v33 }
 0x61e   : > { %2069 = vpow2.f32 %v1341_v35 }
 0x628   : > { %v2064_v36 = vpop.eup %2063 }
 0x629   : > { %v2066_v37 = vpop.eup %2065  ;;  %v1343_v34 = vsel %vm701_vm6, %v2064_v36, 0.0 }
 0x62a   : > { %v2068_v38 = vpop.eup %2067  ;;  %v1344_v39 = vsel %vm701_vm6, %v2066_v37, 0.0 }
 0x62b   : > { %v2070_v40 = vpop.eup %2069  ;;  %v1345_v41 = vadd.f32 %v1344_v39, %v1343_v34  ;;  %v1346_v42 = vsel %vm701_vm6, %v2068_v38, 0.0 }
 0x62c   : > { %v1348_v46 = vsel %vm701_vm6, %v2070_v40, 0.0 }
 0x62d   : > { %v1347_v45 = vadd.f32 %v1346_v42, %v1345_v41 }
 0x62f   : > { %v1349_v47 = vadd.f32 %v1348_v46, %v1347_v45 }
 0x631   : > { %v1350_v48 = vrot.slane %v1349_v47, 4 }
 0x633   : > { %v1351_v44 = vadd.f32 %v1350_v48, %v1349_v47 }
 0x635   : > { %v1352_v43 = vrot.slane %v1351_v44, 2 }
 0x637   : > { %v1353_v49 = vadd.f32 %v1352_v43, %v1351_v44 }
 0x639   : > { %v1354_v50 = vrot.slane %v1353_v49, 1 }
 0x63b   : > { %v1355_v51 = vadd.f32 %v1354_v50, %v1353_v49 }
 0x63d   : > { %2071 = vrcp.f32 %v1355_v51 }
 0x64a   : > { %v2072_v52 = vpop.eup %2071 }
 0x64b   : > { %v1359_v54 = vmul.f32 %v2072_v52, %v2068_v38  ;;  %v1357_v56 = vmul.f32 %v2072_v52, %v2064_v36  ;;  %v1358_v57 = vmul.f32 %v2072_v52, %v2066_v37  ;;  %v1360_v59 = vmul.f32 %v2072_v52, %v2070_v40 }
 0x64d   : > { %1377 = vperm.xlu1 %2026, %v1359_v54   ;;  %1367 = vperm.xlu0 %2025, %v1357_v56   ;;  %v1408_v60 = vmul.f32 %v1404_v53, %v1357_v56  ;;  %v1410_v62 = vmul.f32 %v1406_v55, %v1359_v54  ;;  %v1409_v63 = vmul.f32 %v1405_v58, %v1358_v57 }
 0x64e   : > { %v1411_v1 = vmul.f32 %v1407_v61, %v1360_v59 }
 0x64f   : > { %v1412_v0 = vsel %vm701_vm6, %v1408_v60, 0.0  ;;  %v1413_v2 = vsel %vm701_vm6, %v1409_v63, 0.0  ;;  %v1415_v4 = vsel %vm701_vm6, %v1410_v62, 0.0 }
 0x650   : > { %v1414_v3 = vadd.f32 %v1413_v2, %v1412_v0  ;;  %v1417_v6 = vsel %vm701_vm6, %v1411_v1, 0.0 }
 0x651   : > { %1382 = vperm.xlu1 %2026, %v1360_v59   ;;  %1372 = vperm.xlu0 %2025, %v1358_v57  }
 0x652   : > { %v1416_v5 = vadd.f32 %v1415_v4, %v1414_v3 }
 0x654   : > { %v1418_v7 = vadd.f32 %v1417_v6, %v1416_v5 }
 0x656   : > { %v1419_v16 = vrot.slane %v1418_v7, 4 }
 0x658   : > { %v1420_v17 = vadd.f32 %v1419_v16, %v1418_v7 }
 0x65a   : > { %v1421_v18 = vrot.slane %v1420_v17, 2 }
 0x65c   : > { %v1422_v19 = vadd.f32 %v1421_v18, %v1420_v17 }
 0x65e   : > { %v1423_v20 = vrot.slane %v1422_v19, 1 }
 0x660   : > { %v1424_v21 = vadd.f32 %v1423_v20, %v1422_v19 }
 0x662   : > { %1425 = vst.msk [vmem:[#allocation8] sm:$0x1] %vm641_vm5, %v1424_v21 }
 0x6c8   : > { %v1378_v22 = vpop.permute.xlu1 %1377  ;;  %v1368_v24 = vpop.permute.xlu0 %1367 }
 0x6c9   : > { %v1385_v27 = vmul.f32 %v1368_v24, %v1361_v23  ;;  %v1387_v31 = vmul.f32 %v1378_v22, %v1363_v25 }
 0x6cb   : > { %v1389_v33 = vsel %vm540_vm3, %v1385_v27, 0.0  ;;  %v1392_v34 = vsel %vm540_vm3, %v1387_v31, 0.0 }
 0x6cc   : > { %v1383_v29 = vpop.permute.xlu1 %1382  ;;  %v1373_v30 = vpop.permute.xlu0 %1372 }
 0x6cd   : > { %v1386_v32 = vmul.f32 %v1373_v30, %v1362_v26  ;;  %v1388_v35 = vmul.f32 %v1383_v29, %v1364_v28 }
 0x6cf   : > { %v1390_v36 = vsel %vm540_vm3, %v1386_v32, 0.0  ;;  %v1394_v39 = vsel %vm540_vm3, %v1388_v35, 0.0 }
 0x6d0   : > { %v1391_v37 = vadd.f32 %v1390_v36, %v1389_v33 }
 0x6d2   : > { %v1393_v38 = vadd.f32 %v1392_v34, %v1391_v37 }
 0x6d4   : > { %v1395_v40 = vadd.f32 %v1394_v39, %v1393_v38 }
 0x6d6   : > { %v1396_v41 = vrot.slane %v1395_v40, 4 }
 0x6d8   : > { %v1397_v42 = vadd.f32 %v1396_v41, %v1395_v40 }
 0x6da   : > { %v1398_v45 = vrot.slane %v1397_v42, 2 }
 0x6dc   : > { %v1399_v46 = vadd.f32 %v1398_v45, %v1397_v42 }
 0x6de   : > { %v1400_v47 = vrot.slane %v1399_v46, 1 }
 0x6e0   : > { %v1401_v48 = vadd.f32 %v1400_v47, %v1399_v46 }
 0x6e2   : > { %1403 = vst.msk [vmem:[#allocation7] sm:$0x1] %vm1402_vm8, %v1401_v48 }
 0x6e3 PF: > { %p1741_p7 = scmp.ne.s32.totalorder %s2183_s27, 1 }
 0x6e5   : > { %1429 = sbr.rel (%p1741_p7) target bundleno = 2150 (0x866), region = 122 }
 0x6ea   : > { %v1437_v44 = vld [vmem:[#allocation6 + $0x38] sm:$0xff]  ;;  %v1435_v43 = vld [vmem:[#allocation6 + $0x28] sm:$0xff]  ;;  %v2211_v49 = vmov 0   ;;  %v1436_v50 = vld [vmem:[#allocation6 + $0x30] sm:$0xff]  ;;  %v2212_v52 = vmov 0.0   ;;  %vm2213_vm9 = vmmov 0  }
 0x6eb   : > { %2074 = vset.pattern.permute.xlu1 %v2211_v49  ;;  %2073 = vset.pattern.permute.xlu0 %v2211_v49  ;;  %v1434_v51 = vld [vmem:[#allocation6 + $0x20] sm:$0xff]  ;;  %v1433_v53 = vld [vmem:[#allocation6 + $0x18] sm:$0xff]  ;;  %v1432_v54 = vld [vmem:[#allocation6 + $0x10] sm:$0xff]  ;;  %vm1497_vm10 = vcmask 523264  }
 0x6ec   : > { %1475 = vperm.xlu0 %2073, %v1437_v44   ;;  %1465 = vperm.xlu1 %2074, %v1435_v43   ;;  %v1431_v55 = vld [vmem:[#allocation6 + $0x8] sm:$0xff]  ;;  %v1430_v56 = vld [vmem:[#allocation6] sm:$0xff] }
 0x6ed   : > { %1886 = vmatprep.subr.mxu0 %v2212_v52  ;;  %v1487_v57 = vld [vmem:[#allocation8] sm:$0x1]  ;;  %1902 = vmatprep.mubr.msk.f32.mxu0 %vm2213_vm9, %v2212_v52 }
 0x6f0   : > { %1470 = vperm.xlu0 %2073, %v1436_v50   ;;  %1460 = vperm.xlu1 %2074, %v1434_v51  }
 0x6f4   : > { %1455 = vperm.xlu0 %2073, %v1433_v53   ;;  %1450 = vperm.xlu1 %2074, %v1432_v54  }
 0x6f8   : > { %1445 = vperm.xlu0 %2073, %v1431_v55   ;;  %1440 = vperm.xlu1 %2074, %v1430_v56  }
 0x6fc   : > { %1490 = vperm.xlu0 %2073, %v1487_v57  }
 0x767   : > { %v1476_v58 = vpop.permute.xlu0 %1475  ;;  %v1466_v59 = vpop.permute.xlu1 %1465 }
 0x768   : > { %v1485_v60 = vmul.f32 %v1476_v58, %v2420_v15  ;;  %v1483_v0 = vmul.f32 %v1466_v59, %v2416_v13 }
 0x76a   : > { %1887 = vmatpush3.msra.mxu0 %v1485_v60 }
 0x76b   : > { %v1471_v61 = vpop.permute.xlu0 %1470  ;;  %v1461_v62 = vpop.permute.xlu1 %1460  ;;  %1888 = vmatprep.subr.mxu0 %v2212_v52 }
 0x76c   : > { %v1484_v63 = vmul.f32 %v1471_v61, %v2418_v14  ;;  %v1482_v3 = vmul.f32 %v1461_v62, %v2414_v12  ;;  %v1486_v12 = vld [vmem:[#allocation7] sm:$0x1] }
 0x76e   : > { %1889 = vmatpush3.msra.mxu0 %v1484_v63 }
 0x76f   : > { %1890 = vmatprep.subr.mxu0 %v2212_v52  ;;  %v1456_v1 = vpop.permute.xlu0 %1455  ;;  %v1451_v2 = vpop.permute.xlu1 %1450 }
 0x770   : > { %1891 = vmatpush3.msra.mxu0 %v1483_v0  ;;  %v1481_v4 = vmul.f32 %v1456_v1, %v2412_v11  ;;  %v1480_v5 = vmul.f32 %v1451_v2, %v2410_v10  ;;  %v1493_v11 = vlaneseq }
 0x771   : > { %1892 = vmatprep.subr.mxu0 %v2212_v52 }
 0x772   : > { %1893 = vmatpush3.msra.mxu0 %v1482_v3  ;;  %v1494_v7 = vshrl.u32 %v1493_v11, 7 }
 0x773   : > { %1894 = vmatprep.subr.mxu0 %v2212_v52  ;;  %v1446_v15 = vpop.permute.xlu0 %1445  ;;  %v1441_v6 = vpop.permute.xlu1 %1440 }
 0x774   : > { %1895 = vmatpush3.msra.mxu0 %v1481_v4  ;;  %v1479_v13 = vmul.f32 %v1446_v15, %v2408_v9  ;;  %v1478_v14 = vmul.f32 %v1441_v6, %v2406_v8  ;;  %v1495_v16 = vsub.s32 0, %v1494_v7 }
 0x775   : > { %1896 = vmatprep.subr.mxu0 %v2212_v52 }
 0x776   : > { %1897 = vmatpush3.msra.mxu0 %v1480_v5 }
 0x777   : > { %1898 = vmatprep.subr.mxu0 %v2212_v52  ;;  %v1491_v17 = vpop.permute.xlu0 %1490 }
 0x778   : > { %1899 = vmatpush3.msra.mxu0 %v1479_v13  ;;  %v1496_v10 = vrot.slane %v1491_v17, %v1495_v16 }
 0x779   : > { %1900 = vmatprep.subr.mxu0 %v2212_v52 }
 0x77a   : > { %1901 = vmatpush3.msra.mxu0 %v1478_v14 }
 0x77b   : > { %1903 = vmatmul.mubr.msk.f32.vlgmr.msra.gmra.mxu0 %vm1497_vm10, %v1486_v12 }
 0x83b   : > { %v1567_v18 = vpop.f32.mrf.mxu0 }
 0x83c   : > { %v1568_v19 = vadd.f32 %v1567_v18, %v1496_v10 }
 0x83d   : > { %v1904_v20 = vpop.f32.mrf.mxu0 }
 0x83e   : > { %v1743_v9 = vmul.f32 -1.442695, %v1568_v19 }
 0x840   : > { %2075 = vpow2.f32 %v1743_v9 }
 0x84d   : > { %v2076_v8 = vpop.eup %2075 }
 0x84e   : > { %v1574_v21 = vadd.f32 1.0, %v2076_v8 }
 0x850   : > { %2077 = vrcp.f32 %v1574_v21 }
 0x85d   : > { %v2078_v22 = vpop.eup %2077 }
 0x85e   : > { %v1580_v23 = vrot.slane %v2078_v22, %v1495_v16 }
 0x860   : > { %v1581_v24 = vmul.f32 %v1580_v23, %v1478_v14  ;;  %v1582_v25 = vmul.f32 %v1580_v23, %v1479_v13  ;;  %v1583_v26 = vmul.f32 %v1580_v23, %v1480_v5  ;;  %v1584_v27 = vmul.f32 %v1580_v23, %v1481_v4 }
 0x861   : > { %v1585_v28 = vmul.f32 %v1580_v23, %v1482_v3  ;;  %v1586_v29 = vmul.f32 %v1580_v23, %v1483_v0  ;;  %v1587_v30 = vmul.f32 %v1580_v23, %v1484_v63  ;;  %v1588_v31 = vmul.f32 %v1580_v23, %v1485_v60 }
 0x862   : > { %1589 = vst [vmem:[%s2422_s24] sm:$0xff] %v1581_v24  ;;  %1590 = vst [vmem:[%s2422_s24 + $0x8] sm:$0xff] %v1582_v25 }
 0x863   : > { %1591 = vst [vmem:[%s2422_s24 + $0x10] sm:$0xff] %v1583_v26  ;;  %1592 = vst [vmem:[%s2422_s24 + $0x18] sm:$0xff] %v1584_v27 }
 0x864   : > { %1593 = vst [vmem:[%s2422_s24 + $0x20] sm:$0xff] %v1585_v28  ;;  %1594 = vst [vmem:[%s2422_s24 + $0x28] sm:$0xff] %v1586_v29 }
 0x865   : > { %1595 = vst [vmem:[%s2422_s24 + $0x30] sm:$0xff] %v1587_v30  ;;  %1596 = vst [vmem:[%s2422_s24 + $0x38] sm:$0xff] %v1588_v31 }
 0x866 PF: > { %s2881_s2 = sld [smem:[#allocation13_spill]]  ;;  %s1605_s3 = smul.u32 %s2179_s26, %s2183_s27 }
 0x867   : > { %s1613_s6 = sshll.u32 %s2422_s24, 4  ;;  %s2882_s4 = sld [smem:[#allocation28_spill]]  ;;  %s2746_s6 = int_to_ptr.vmem [resolvable:$true] %s1613_s6 }
 0x868   : > { %s2883_s9 = sand.u32 1, %s2163_s22   ;;  %s2079_s15 = scalar_lea.vmem %s2746_s6, 1024 }
 0x869   : > { %s2755_s12 = scalar_lea.sflag [#allocation11], %s2883_s9  ;;  %p2080_p8 = scmp.ne.s32.totalorder %s2746_s6, %s2079_s15 }
 0x86a   : > { %s2214_s26 = smov [#allocation10]  }
 0x86b   : > { %p2081_p10 = pnand %p2080_p8, %p2374_p9  ;;  %s2083_s27 = sshll.u32 %s2214_s26, 4  ;;  %s2084_s27 = int_to_ptr.vmem [resolvable:$false] %s2083_s27 }
 0x86c   : > { %s1745_s30 = sshll.u32 %s2881_s2, 4  ;;  %s2085_s24 = scalar_lea.vmem %s2084_s27, 2048 }
 0x86d   : > { %s1610_s28 = sadd.s32 %s1745_s30, %s1605_s3  ;;  %p2082_p11 = pneg %p2081_p10 }
 0x86e   : > { %s1746_s8 = sshll.u32 %s1610_s28, 7  ;;  %p2086_p12 = scmp.lt.s32.totalorder %s2746_s6, %s2084_s27 }
 0x86f   : > { %s2751_s5 = scalar_lea.hbm %s2882_s4, %s1746_s8  ;;  %p2087_p0 = scmp.lt.s32.totalorder %s2085_s24, %s2079_s15 }
 0x871   : > { %p2088_p1 = por %p2087_p0, %p2086_p12 }
 0x873   : > { %p2089_p2 = pnand %p2088_p1, %p2082_p11 }
 0x875   : > { %2092 = shalt.err (!%p2089_p2)
}
 0x876   : > { %s2093_s9 = scalar_lea.hbm %s2751_s5, 1024  ;;  %s2097_s30 = scalar_lea.hbm %s2882_s4, 4096 }
 0x877   : > { %p2094_p3 = scmp.ne.s32.totalorder %s2751_s5, %s2093_s9  ;;  %p2098_p6 = scmp.lt.s32.totalorder %s2751_s5, %s2882_s4 }
 0x878   : > { %p2099_p7 = scmp.lt.s32.totalorder %s2097_s30, %s2093_s9 }
 0x879   : > { %p2095_p4 = pnand %p2094_p3, %p2374_p9 }
 0x87a   : > { %p2100_p8 = por %p2099_p7, %p2098_p6 }
 0x87b   : > { %p2096_p5 = pneg %p2095_p4 }
 0x87d   : > { %p2101_p10 = pnand %p2100_p8, %p2096_p5 }
 0x87f   : > { %2104 = shalt.err (!%p2101_p10)
}
 0x880   : > { %s2215_s15 = smov 128   ;;  %s2216_s0 = smov 256  }
 0x881   : > { %s2217_s1 = smov 8  }
 0x882   : > { %1905 = dma.vmem_to_hbm [thread:$0]  (%p2374_p9), %s2746_s6, 1024, %s2751_s5, %s2755_s12, %s2215_s15, %s2216_s0, %s2217_s1  }
 0x883 PF: > { %p1911_p11 = scmp.ge.s32.totalorder %s2203_s14, 2  ;;  %s1628_s26 = sand.u32 1, %s2159_s21  }
 0x884   : > { %s1629_s27 = scalar_lea.sflag [#allocation11], %s1628_s26 }
 0x885   : > { %p1908_p12 = pnand %p1911_p11, %p2381_p13 }
 0x887   : > { %p1909_p0 = pneg %p1908_p12 }
 0x889   : > { %2154 = dma.done.wait (%p1909_p0), %s1629_s27, 1024  }
 0x88a   : > { %2156 = vsyncadd (%p1909_p0), %s1629_s27, 4294966272  ;;  %s25_s14 = sadd.s32 1, %s2203_s14   ;;  %s2884_s27 = sld [smem:[#allocation14_spill]] }
 0x88b   : > { %p22_p1 = scmp.ge.s32.totalorder %s25_s14, 10   ;;  %s2885_s30 = sld [smem:[#allocation15_spill]] }
 0x88c   : > { %s2886_s21 = smov %s2163_s22  ;;  %s2887_s22 = smov %s2167_s23 }
 0x88d   : > { %s2888_s23 = smov %s2389_s11  ;;  %s2889_s24 = smov %s2175_s25 }
 0x88e   : > { %s2890_s25 = smov %s2386_s10  ;;  %s2891_s26 = smov %s2191_s29 }
 0x88f   : > { %s2892_s28 = smov %s2199_s13  ;;  %s2893_s29 = smov %s2896_s17 }
 0x890   : > { %s2894_s13 = smov %s2904_s19  ;;  %24 = sbr.rel (!%p22_p1) target bundleno = 21 (0x15), region = 162 }
 0x895   :  { %1634 = vsyncpa [#allocation11], 1 }
 0x896   :  { %1636 = vsyncpa [#allocation11 + $0x1], 1 }

</bundles_post_ra>
